<compile_context>
chip_gen: v7x
topology: tpu7x:2x2x1
jax: 0.10.0
libtpu: 0.0.40
codegen_flags: <defaults>
</compile_context>

<pallas_src>
import functools
from typing import NamedTuple

import numpy as np
import jax
import jax.numpy as jnp
from jax.experimental import pallas as pl
from jax.experimental.pallas import tpu as pltpu


class ConvMeta(NamedTuple):
    in_ch: int
    C: int      # inter_capacity
    G: int      # num_scale (concatenated channel groups)
    NB: int     # num_scale - 1 DSC blocks
    H: int
    W: int


# ------------------------------- fused kernel -------------------------------

def _fused_kernel(x_ref, wi_ref, dw_ref, pw_ref, psel_ref, pconv_ref, pt_ref,
                  bsel_ref, o_ref, *, H):
    """Fused Our_Conv2d forward for one batch-block of BB images.

    x_ref:     (R, W*Cin)     lane-dense input, R = BB*H rows (BB images stacked)
    wi_ref:    (W*Cin, WC)    block-diagonal init 1x1 weight  (bf16/f32)
    dw_ref:    (NB, 9, WC)    depthwise taps, pre-tiled over W (f32)
    pw_ref:    (NB, WC, WC)   block-diagonal pointwise weights (bf16/f32)
    psel_ref:  (BBp, R)       row -> batch pooling selector (f32)
    pconv_ref: (G, WC, gc)    per-group (pool selector @ ECA band) / (H*W)
    pt_ref:    (gc, G*WC)     per-channel-scale -> lane broadcast matrix
    bsel_ref:  (R, BBp)       batch -> row broadcast selector (f32)
    o_ref:     (G, R, WC)     output; group g holds stage (G-1-g)'s output
    """
    G, R, WC = o_ref.shape
    NB = dw_ref.shape[0]
    gc = pt_ref.shape[0]
    C = gc // G
    f32 = jnp.float32
    cdt = wi_ref.dtype                      # MXU operand dtype (bf16 or f32)

    # --- boundary masks, hoisted out of the block/tap loops ------------------
    row = jax.lax.broadcasted_iota(jnp.int32, (R, WC), 0)
    lane = jax.lax.broadcasted_iota(jnp.int32, (R, WC), 1)
    rh = (row & (H - 1)) if (H & (H - 1)) == 0 else row % H   # row within image
    top = rh < 1
    bot = rh >= H - 1
    left = lane < C
    right = lane >= WC - C

    conv_acc = jnp.zeros((psel_ref.shape[0], gc), f32)        # ECA pre-activation

    def finish_stage(out_stage, g, conv_acc):
        # Stream the unscaled group output to o_ref (keeps live vregs small)
        # and fold its global-average-pool + ECA-band contribution into
        # conv_acc; per-group pconv blocks avoid any in-kernel lane concat.
        o_ref[g] = out_stage.astype(o_ref.dtype)
        pooled = jnp.dot(psel_ref[...], out_stage,
                         preferred_element_type=f32)          # (BBp, WC)
        return conv_acc + jnp.dot(pooled, pconv_ref[g],
                                  preferred_element_type=f32)  # (BBp, gc)

    # init 1x1 conv: all BB*H pixel-rows through the MXU in one matmul.
    out = jnp.dot(x_ref[...], wi_ref[...], preferred_element_type=f32)  # (R, WC) f32
    conv_acc = finish_stage(out, G - 1, conv_acc)

    for blk in range(NB):                                     # static unroll (NB==3)
        wt = dw_ref[blk]                                      # (9, WC) f32 taps

        # depthwise 3x3, stride 1, pad 1 — halo via XLU rolls + hoisted masks.
        # Masks on (row % H) also stop halos from leaking across stacked images.
        up = jnp.where(top, 0.0, pltpu.roll(out, shift=1, axis=0))      # x[h-1]
        dn = jnp.where(bot, 0.0, pltpu.roll(out, shift=R - 1, axis=0))  # x[h+1]
        acc = jnp.zeros((R, WC), f32)
        for kh, xr in enumerate((up, out, dn)):
            xl = jnp.where(left, 0.0, pltpu.roll(xr, shift=C, axis=1))       # w-1
            xg = jnp.where(right, 0.0, pltpu.roll(xr, shift=WC - C, axis=1))  # w+1
            acc = (acc + xl * wt[3 * kh]
                   + xr * wt[3 * kh + 1]
                   + xg * wt[3 * kh + 2])

        # pointwise 1x1 conv as a block-diagonal MXU matmul (bf16 operands).
        out = jnp.dot(acc.astype(cdt), pw_ref[blk], preferred_element_type=f32)
        conv_acc = finish_stage(out, NB - 1 - blk, conv_acc)

    # --- ECA: sigmoid on the EUP, then broadcast scales back to lanes --------
    scale = jax.nn.sigmoid(conv_acc)                                   # (BBp, gc)
    scale_lanes = jnp.dot(scale, pt_ref[...],
                          preferred_element_type=f32)                  # (BBp, G*WC)
    bcast = jnp.dot(bsel_ref[...], scale_lanes,
                    preferred_element_type=f32)                        # (R, G*WC)
    for g in range(G):
        o_ref[g] = (o_ref[g] * bcast[:, g * WC:(g + 1) * WC]).astype(o_ref.dtype)


# --------------------------- one-time weight setup ---------------------------

def precompute_our_conv2d(params, *, H, W, compute_dtype=jnp.bfloat16):
    """Expand module weights into the kernel's lane-dense block-diagonal form.

    Runs ONCE at parameter-setup time; the per-call path only feeds the
    prepared arrays straight to pallas_call.
    """
    f32 = jnp.float32
    init_w = params["init_w"].astype(f32)          # (Cin, C)
    Cin, C = init_w.shape
    NB = len(params["dw_ws"])
    G = NB + 1
    WC = W * C
    gc = G * C
    assert H % 8 == 0, "H must be a multiple of 8 (sublane tiling)"
    assert WC % 128 == 0, "W * inter_capacity must be a multiple of 128 (lane-dense)"

    eye_w = jnp.eye(W, dtype=f32)
    wi = jnp.kron(eye_w, init_w).astype(compute_dtype)                     # (W*Cin, WC)
    dw = jnp.stack([jnp.tile(w.astype(f32), (1, W))
                    for w in params["dw_ws"]])                             # (NB, 9, WC)
    pw = jnp.stack([jnp.kron(eye_w, w.astype(f32))
                    for w in params["pw_ws"]]).astype(compute_dtype)       # (NB, WC, WC)

    # per-channel scale -> lane broadcast:  pt[g*C+c, g*WC+w*C+cc] = 1{c==cc}
    pt = jnp.kron(jnp.eye(G, dtype=f32),
                  jnp.tile(jnp.eye(C, dtype=f32), (1, W)))                 # (gc, G*WC)

    # ECA Conv1d(k=3, pad=1) as a Toeplitz band, folded with the pooling
    # selector and the 1/(H*W) mean, split into per-group blocks so the kernel
    # needs no lane-axis concatenate.
    # TODO(synk): for very large channel counts replace the O(C^2) band with
    # in-kernel pltpu.roll of the pooled vector.
    idx = jnp.arange(gc)
    diff = idx[:, None] - idx[None, :]
    w3 = params["eca_w"].astype(f32)
    band = (jnp.where(diff == -1, w3[0], 0.0)
            + jnp.where(diff == 0, w3[1], 0.0)
            + jnp.where(diff == 1, w3[2], 0.0))                            # (gc, gc)
    pconv = (jnp.broadcast_to(band.reshape(G, 1, C, gc), (G, W, C, gc))
             .reshape(G, WC, gc) * (1.0 / (H * W)))                        # (G, WC, gc)

    prep = {"wi": wi, "dw": dw, "pw": pw, "pconv": pconv, "pt": pt}
    meta = ConvMeta(in_ch=Cin, C=C, G=G, NB=NB, H=H, W=W)
    return prep, meta


def _pick_bb(B, H, target_rows=256):
    """Batch-block size: aim for >=~256 LHS rows per matmul (fills the MXU on
    v6e/v7x, >2x the v5e requirement) while keeping >=2 grid steps so both
    v7x TensorCores get work."""
    cap = max(1, B // 2)                    # keep >= 2 grid steps when B >= 2
    want = max(1, target_rows // H)
    bb = 1
    for d in range(1, B + 1):
        if B % d == 0 and d <= min(cap, want):
            bb = d
    return bb


# --------------------------------- wrappers ----------------------------------

def our_conv2d_lane_dense(x_lane, prep, meta):
    """Fused forward on lane-dense activations.

    x_lane: (B*H, W*Cin) in the prepared compute dtype.
    returns (G, B*H, W*C) float32; group 0 = newest DSC block, group G-1 = init
    (matches the torch.cat((out, y), dim=1) channel order).
    """
    H, W, C, G, NB = meta.H, meta.W, meta.C, meta.G, meta.NB
    WC, gc = W * C, G * C
    BH, WCin = x_lane.shape
    assert WCin == W * meta.in_ch and BH % H == 0
    B = BH // H
    BB = _pick_bb(B, H)
    R = BB * H
    BBp = max(BB, 8)            # pad the tiny batch axis of the ECA matmuls

    # Pool / broadcast selectors (compile-time numpy constants).
    psel = np.zeros((BBp, R), np.float32)
    for b in range(BB):
        psel[b, b * H:(b + 1) * H] = 1.0
    bsel = np.ascontiguousarray(psel.T)

    kernel = functools.partial(_fused_kernel, H=H)

    # NOTE: weight index_maps are constant so they are DMA'd once; VMEM per
    # step is <1 MiB even at BB=16, so no vmem_limit override is needed.
    return pl.pallas_call(
        kernel,
        out_shape=jax.ShapeDtypeStruct((G, B * H, WC), jnp.float32),
        grid=(B // BB,),
        in_specs=[
            pl.BlockSpec((R, WCin), lambda b: (b, 0)),
            pl.BlockSpec((WCin, WC), lambda b: (0, 0)),
            pl.BlockSpec((NB, 9, WC), lambda b: (0, 0, 0)),
            pl.BlockSpec((NB, WC, WC), lambda b: (0, 0, 0)),
            pl.BlockSpec((BBp, R), lambda b: (0, 0)),
            pl.BlockSpec((G, WC, gc), lambda b: (0, 0, 0)),
            pl.BlockSpec((gc, G * WC), lambda b: (0, 0)),
            pl.BlockSpec((R, BBp), lambda b: (0, 0)),
        ],
        out_specs=pl.BlockSpec((G, R, WC), lambda b: (0, b, 0)),
        compiler_params=pltpu.CompilerParams(
            dimension_semantics=("parallel",)),
    )(x_lane, prep["wi"], prep["dw"], prep["pw"], psel, prep["pconv"],
      prep["pt"], bsel)


def our_conv2d_forward(x_nchw, prep, *, meta):
    """Our_Conv2d.forward with NCHW in/out (parity with the PyTorch module).

    In a full network, call `our_conv2d_lane_dense` directly and stay in the
    (B*H, W*C) layout between layers to skip these HBM transposes.
    """
    B, Cin, H, W = x_nchw.shape
    assert (Cin, H, W) == (meta.in_ch, meta.H, meta.W)
    cdt = prep["wi"].dtype
    x_lane = (jnp.transpose(x_nchw, (0, 2, 3, 1))
              .reshape(B * H, W * Cin).astype(cdt))      # bf16 halves HBM traffic
    out = our_conv2d_lane_dense(x_lane, prep, meta)      # (G, B*H, WC) f32
    C, G = meta.C, meta.G
    return (out.reshape(G, B, H, W, C)
            .transpose(1, 0, 4, 2, 3)
            .reshape(B, G * C, H, W))


# ------------------------------ params & checks ------------------------------

def make_params(key, in_ch, out_ch, num_scale=4):
    """Deterministic synthetic parameters (shapes match the PyTorch module)."""
    inter = out_ch // num_scale
    n_dsc = num_scale - 1
    keys = jax.random.split(key, 2 + 2 * n_dsc)
    params = {
        # Conv2d(in_ch, inter, 1, bias=False) -> matmul weight (Cin, Cout)
        "init_w": 0.1 * jax.random.normal(keys[0], (in_ch, inter), jnp.float32),
        "dw_ws": [],   # depthwise Conv2d(inter, inter, 3, groups=inter) -> (9, inter)
        "pw_ws": [],   # pointwise Conv2d(inter, inter, 1) -> (inter, inter)
        # ECA Conv1d(1, 1, 3, padding=1, bias=False) -> (3,)
        "eca_w": 0.5 * jax.random.normal(keys[1], (3,), jnp.float32),
    }
    for i in range(n_dsc):
        params["dw_ws"].append(
            0.1 * jax.random.normal(keys[2 + 2 * i], (9, inter), jnp.float32))
        params["pw_ws"].append(
            0.1 * jax.random.normal(keys[3 + 2 * i], (inter, inter), jnp.float32))
    return params


def _reference_forward(x_nchw, params):
    """Pure-JAX (no Pallas) reference for numerical sanity checks."""
    hp = jax.lax.Precision.HIGHEST
    x = jnp.transpose(x_nchw, (0, 2, 3, 1)).astype(jnp.float32)       # NHWC
    out = jnp.einsum("bhwc,cd->bhwd", x, params["init_w"], precision=hp)
    cat = out
    H, W = out.shape[1], out.shape[2]
    for dw, pw in zip(params["dw_ws"], params["pw_ws"]):
        xp = jnp.pad(out, ((0, 0), (1, 1), (1, 1), (0, 0)))
        acc = jnp.zeros_like(out)
        for kh in range(3):
            for kw in range(3):
                acc = acc + xp[:, kh:kh + H, kw:kw + W, :] * dw[3 * kh + kw]
        out = jnp.einsum("bhwc,cd->bhwd", acc, pw, precision=hp)
        cat = jnp.concatenate([out, cat], axis=-1)
    pooled = jnp.mean(cat, axis=(1, 2))
    pp = jnp.pad(pooled, ((0, 0), (1, 1)))
    w3 = params["eca_w"]
    conv = w3[0] * pp[:, :-2] + w3[1] * pp[:, 1:-1] + w3[2] * pp[:, 2:]
    scale = jax.nn.sigmoid(conv)
    cat = cat * scale[:, None, None, :]
    return jnp.transpose(cat, (0, 3, 1, 2))


if __name__ == "__main__":
    key = jax.random.PRNGKey(0)
    kx, kp = jax.random.split(key)

    B, in_ch, H, W = 2, 4, 16, 16
    out_ch, num_scale = 32, 4            # inter_capacity = 8 -> W*C = 128 lanes

    x = jax.random.normal(kx, (B, in_ch, H, W), jnp.float32)
    params = make_params(kp, in_ch, out_ch, num_scale)
    y_ref = _reference_forward(x, params)

    fwd = jax.jit(our_conv2d_forward, static_argnames="meta")

    # 1) f32-operand variant: tight structural check (halo / masks / ordering).
    prep32, meta = precompute_our_conv2d(params, H=H, W=W,
                                         compute_dtype=jnp.float32)
    y32 = fwd(x, prep32, meta=meta)
    jax.block_until_ready(y32)
    assert y32.shape == (B, num_scale * (out_ch // num_scale), H, W), y32.shape
    err32 = float(jnp.max(jnp.abs(y32 - y_ref)) / (jnp.max(jnp.abs(y_ref)) + 1e-8))
    assert err32 < 1e-2, f"f32 variant mismatch: {err32}"

    # 2) bf16 MXU-operand production path.
    prep16, _ = precompute_our_conv2d(params, H=H, W=W,
                                      compute_dtype=jnp.bfloat16)
    y16 = fwd(x, prep16, meta=meta)
    jax.block_until_ready(y16)
    assert y16.shape == y_ref.shape
    err16 = float(jnp.max(jnp.abs(y16 - y_ref)) / (jnp.max(jnp.abs(y_ref)) + 1e-8))
    assert err16 < 2e-2, f"bf16 variant mismatch: {err16}"

    print("KERNEL_OK")
</pallas_src>

<mosaic_0001>
module attributes {stable_mosaic.version = 11 : i64} {
  func.func @_fused_kernel(%arg0: i32, %arg1: memref<16x64xf32, #tpu.memory_space<vmem>>, %arg2: memref<64x128xf32, #tpu.memory_space<vmem>>, %arg3: memref<3x9x128xf32, #tpu.memory_space<vmem>>, %arg4: memref<3x128x128xf32, #tpu.memory_space<vmem>>, %arg5: memref<8x16xf32, #tpu.memory_space<vmem>>, %arg6: memref<4x128x32xf32, #tpu.memory_space<vmem>>, %arg7: memref<32x512xf32, #tpu.memory_space<vmem>>, %arg8: memref<16x8xf32, #tpu.memory_space<vmem>>, %arg9: memref<4x16x128xf32, #tpu.memory_space<vmem>>) attributes {dimension_semantics = [#tpu.dimension_semantics<parallel>], iteration_bounds = array<i64: 2>, scalar_prefetch = 0 : i64, scratch_operands = 0 : i64, tpu.core_type = #tpu.core_type<tc>, window_params = [{transform_indices = @transform_0, window_bounds = array<i64: 16, 64>}, {pipeline_mode = #tpu.pipeline_mode<synchronous>, transform_indices = @transform_1, window_bounds = array<i64: 64, 128>}, {pipeline_mode = #tpu.pipeline_mode<synchronous>, transform_indices = @transform_2, window_bounds = array<i64: 3, 9, 128>}, {pipeline_mode = #tpu.pipeline_mode<synchronous>, transform_indices = @transform_3, window_bounds = array<i64: 3, 128, 128>}, {pipeline_mode = #tpu.pipeline_mode<synchronous>, transform_indices = @transform_4, window_bounds = array<i64: 8, 16>}, {pipeline_mode = #tpu.pipeline_mode<synchronous>, transform_indices = @transform_5, window_bounds = array<i64: 4, 128, 32>}, {pipeline_mode = #tpu.pipeline_mode<synchronous>, transform_indices = @transform_6, window_bounds = array<i64: 32, 512>}, {pipeline_mode = #tpu.pipeline_mode<synchronous>, transform_indices = @transform_7, window_bounds = array<i64: 16, 8>}, {transform_indices = @transform_8, window_bounds = array<i64: 4, 16, 128>}]} {
    %0 = tpu.iota {dimensions = array<i32: 0>} : vector<16x128xi32>
    %1 = tpu.iota {dimensions = array<i32: 1>} : vector<16x128xi32>
    %c15_i32 = arith.constant 15 : i32
    %2 = vector.broadcast %c15_i32 : i32 to vector<16x128xi32>
    %3 = arith.andi %0, %2 : vector<16x128xi32>
    %c1_i32 = arith.constant 1 : i32
    %4 = vector.broadcast %c1_i32 : i32 to vector<16x128xi32>
    %5 = arith.cmpi slt, %3, %4 : vector<16x128xi32>
    %c15_i32_0 = arith.constant 15 : i32
    %6 = vector.broadcast %c15_i32_0 : i32 to vector<16x128xi32>
    %7 = arith.cmpi sge, %3, %6 : vector<16x128xi32>
    %c8_i32 = arith.constant 8 : i32
    %8 = vector.broadcast %c8_i32 : i32 to vector<16x128xi32>
    %9 = arith.cmpi slt, %1, %8 : vector<16x128xi32>
    %c120_i32 = arith.constant 120 : i32
    %10 = vector.broadcast %c120_i32 : i32 to vector<16x128xi32>
    %11 = arith.cmpi sge, %1, %10 : vector<16x128xi32>
    %cst = arith.constant 0.000000e+00 : f32
    %12 = vector.broadcast %cst : f32 to vector<8x32xf32>
    %c0 = arith.constant 0 : index
    %c0_1 = arith.constant 0 : index
    %13 = vector.load %arg1[%c0, %c0_1] : memref<16x64xf32, #tpu.memory_space<vmem>>, vector<16x64xf32>
    %c0_2 = arith.constant 0 : index
    %c0_3 = arith.constant 0 : index
    %14 = vector.load %arg2[%c0_2, %c0_3] : memref<64x128xf32, #tpu.memory_space<vmem>>, vector<64x128xf32>
    %cst_4 = arith.constant dense<0.000000e+00> : vector<16x128xf32>
    %15 = tpu.matmul %13, %14, %cst_4 {dimension_numbers = #tpu.dot_dimension_numbers<[1], [0], [0], [1], [0, 0, 1, 1], [], []>} : vector<16x64xf32>, vector<64x128xf32>, vector<16x128xf32> -> vector<16x128xf32>
    %c3 = arith.constant 3 : index
    %c0_5 = arith.constant 0 : index
    %c0_6 = arith.constant 0 : index
    %16 = vector.load %arg9[%c3, %c0_5, %c0_6] : memref<4x16x128xf32, #tpu.memory_space<vmem>>, vector<1x16x128xf32>
    %17 = vector.shape_cast %16 : vector<1x16x128xf32> to vector<16x128xf32>
    %18 = vector.shape_cast %15 : vector<16x128xf32> to vector<1x16x128xf32>
    tpu.vector_store %arg9[%c3, %c0_5, %c0_6], %18 {strides = array<i32>} : memref<4x16x128xf32, #tpu.memory_space<vmem>>, vector<1x16x128xf32>,
    %c0_7 = arith.constant 0 : index
    %c0_8 = arith.constant 0 : index
    %19 = vector.load %arg5[%c0_7, %c0_8] : memref<8x16xf32, #tpu.memory_space<vmem>>, vector<8x16xf32>
    %cst_9 = arith.constant dense<0.000000e+00> : vector<8x128xf32>
    %20 = tpu.matmul %19, %15, %cst_9 {dimension_numbers = #tpu.dot_dimension_numbers<[1], [0], [0], [1], [0, 0, 1, 1], [], []>} : vector<8x16xf32>, vector<16x128xf32>, vector<8x128xf32> -> vector<8x128xf32>
    %c3_10 = arith.constant 3 : index
    %c0_11 = arith.constant 0 : index
    %c0_12 = arith.constant 0 : index
    %21 = vector.load %arg6[%c3_10, %c0_11, %c0_12] : memref<4x128x32xf32, #tpu.memory_space<vmem>>, vector<1x128x32xf32>
    %22 = vector.shape_cast %21 : vector<1x128x32xf32> to vector<128x32xf32>
    %cst_13 = arith.constant dense<0.000000e+00> : vector<8x32xf32>
    %23 = tpu.matmul %20, %22, %cst_13 {dimension_numbers = #tpu.dot_dimension_numbers<[1], [0], [0], [1], [0, 0, 1, 1], [], []>} : vector<8x128xf32>, vector<128x32xf32>, vector<8x32xf32> -> vector<8x32xf32>
    %24 = arith.addf %12, %23 : vector<8x32xf32>
    %c0_14 = arith.constant 0 : index
    %c0_15 = arith.constant 0 : index
    %c0_16 = arith.constant 0 : index
    %25 = vector.load %arg3[%c0_14, %c0_15, %c0_16] : memref<3x9x128xf32, #tpu.memory_space<vmem>>, vector<1x9x128xf32>
    %26 = vector.shape_cast %25 : vector<1x9x128xf32> to vector<9x128xf32>
    %c1_i32_17 = arith.constant 1 : i32
    %27 = tpu.dynamic_rotate %15 by %c1_i32_17 dim 0 : vector<16x128xf32>, i32 -> vector<16x128xf32>
    %cst_18 = arith.constant 0.000000e+00 : f32
    %28 = vector.broadcast %cst_18 : f32 to vector<16x128xf32>
    %29 = arith.select %5, %28, %27 : vector<16x128xi1>, vector<16x128xf32>
    %c15_i32_19 = arith.constant 15 : i32
    %30 = tpu.dynamic_rotate %15 by %c15_i32_19 dim 0 : vector<16x128xf32>, i32 -> vector<16x128xf32>
    %cst_20 = arith.constant 0.000000e+00 : f32
    %31 = vector.broadcast %cst_20 : f32 to vector<16x128xf32>
    %32 = arith.select %7, %31, %30 : vector<16x128xi1>, vector<16x128xf32>
    %cst_21 = arith.constant 0.000000e+00 : f32
    %33 = vector.broadcast %cst_21 : f32 to vector<16x128xf32>
    %c8_i32_22 = arith.constant 8 : i32
    %34 = tpu.dynamic_rotate %29 by %c8_i32_22 dim 1 : vector<16x128xf32>, i32 -> vector<16x128xf32>
    %cst_23 = arith.constant 0.000000e+00 : f32
    %35 = vector.broadcast %cst_23 : f32 to vector<16x128xf32>
    %36 = arith.select %9, %35, %34 : vector<16x128xi1>, vector<16x128xf32>
    %c120_i32_24 = arith.constant 120 : i32
    %37 = tpu.dynamic_rotate %29 by %c120_i32_24 dim 1 : vector<16x128xf32>, i32 -> vector<16x128xf32>
    %cst_25 = arith.constant 0.000000e+00 : f32
    %38 = vector.broadcast %cst_25 : f32 to vector<16x128xf32>
    %39 = arith.select %11, %38, %37 : vector<16x128xi1>, vector<16x128xf32>
    %40 = vector.extract_strided_slice %26 {offsets = [0, 0], sizes = [1, 128], strides = [1, 1]} : vector<9x128xf32> to vector<1x128xf32>
    %41 = vector.shape_cast %40 : vector<1x128xf32> to vector<128xf32>
    %42 = vector.shape_cast %41 : vector<128xf32> to vector<1x128xf32>
    %43 = vector.broadcast %42 : vector<1x128xf32> to vector<16x128xf32>
    %44 = arith.mulf %36, %43 : vector<16x128xf32>
    %45 = arith.addf %33, %44 : vector<16x128xf32>
    %46 = vector.extract_strided_slice %26 {offsets = [1, 0], sizes = [1, 128], strides = [1, 1]} : vector<9x128xf32> to vector<1x128xf32>
    %47 = vector.shape_cast %46 : vector<1x128xf32> to vector<128xf32>
    %48 = vector.shape_cast %47 : vector<128xf32> to vector<1x128xf32>
    %49 = vector.broadcast %48 : vector<1x128xf32> to vector<16x128xf32>
    %50 = arith.mulf %29, %49 : vector<16x128xf32>
    %51 = arith.addf %45, %50 : vector<16x128xf32>
    %52 = vector.extract_strided_slice %26 {offsets = [2, 0], sizes = [1, 128], strides = [1, 1]} : vector<9x128xf32> to vector<1x128xf32>
    %53 = vector.shape_cast %52 : vector<1x128xf32> to vector<128xf32>
    %54 = vector.shape_cast %53 : vector<128xf32> to vector<1x128xf32>
    %55 = vector.broadcast %54 : vector<1x128xf32> to vector<16x128xf32>
    %56 = arith.mulf %39, %55 : vector<16x128xf32>
    %57 = arith.addf %51, %56 : vector<16x128xf32>
    %c8_i32_26 = arith.constant 8 : i32
    %58 = tpu.dynamic_rotate %15 by %c8_i32_26 dim 1 : vector<16x128xf32>, i32 -> vector<16x128xf32>
    %cst_27 = arith.constant 0.000000e+00 : f32
    %59 = vector.broadcast %cst_27 : f32 to vector<16x128xf32>
    %60 = arith.select %9, %59, %58 : vector<16x128xi1>, vector<16x128xf32>
    %c120_i32_28 = arith.constant 120 : i32
    %61 = tpu.dynamic_rotate %15 by %c120_i32_28 dim 1 : vector<16x128xf32>, i32 -> vector<16x128xf32>
    %cst_29 = arith.constant 0.000000e+00 : f32
    %62 = vector.broadcast %cst_29 : f32 to vector<16x128xf32>
    %63 = arith.select %11, %62, %61 : vector<16x128xi1>, vector<16x128xf32>
    %64 = vector.extract_strided_slice %26 {offsets = [3, 0], sizes = [1, 128], strides = [1, 1]} : vector<9x128xf32> to vector<1x128xf32>
    %65 = vector.shape_cast %64 : vector<1x128xf32> to vector<128xf32>
    %66 = vector.shape_cast %65 : vector<128xf32> to vector<1x128xf32>
    %67 = vector.broadcast %66 : vector<1x128xf32> to vector<16x128xf32>
    %68 = arith.mulf %60, %67 : vector<16x128xf32>
    %69 = arith.addf %57, %68 : vector<16x128xf32>
    %70 = vector.extract_strided_slice %26 {offsets = [4, 0], sizes = [1, 128], strides = [1, 1]} : vector<9x128xf32> to vector<1x128xf32>
    %71 = vector.shape_cast %70 : vector<1x128xf32> to vector<128xf32>
    %72 = vector.shape_cast %71 : vector<128xf32> to vector<1x128xf32>
    %73 = vector.broadcast %72 : vector<1x128xf32> to vector<16x128xf32>
    %74 = arith.mulf %15, %73 : vector<16x128xf32>
    %75 = arith.addf %69, %74 : vector<16x128xf32>
    %76 = vector.extract_strided_slice %26 {offsets = [5, 0], sizes = [1, 128], strides = [1, 1]} : vector<9x128xf32> to vector<1x128xf32>
    %77 = vector.shape_cast %76 : vector<1x128xf32> to vector<128xf32>
    %78 = vector.shape_cast %77 : vector<128xf32> to vector<1x128xf32>
    %79 = vector.broadcast %78 : vector<1x128xf32> to vector<16x128xf32>
    %80 = arith.mulf %63, %79 : vector<16x128xf32>
    %81 = arith.addf %75, %80 : vector<16x128xf32>
    %c8_i32_30 = arith.constant 8 : i32
    %82 = tpu.dynamic_rotate %32 by %c8_i32_30 dim 1 : vector<16x128xf32>, i32 -> vector<16x128xf32>
    %cst_31 = arith.constant 0.000000e+00 : f32
    %83 = vector.broadcast %cst_31 : f32 to vector<16x128xf32>
    %84 = arith.select %9, %83, %82 : vector<16x128xi1>, vector<16x128xf32>
    %c120_i32_32 = arith.constant 120 : i32
    %85 = tpu.dynamic_rotate %32 by %c120_i32_32 dim 1 : vector<16x128xf32>, i32 -> vector<16x128xf32>
    %cst_33 = arith.constant 0.000000e+00 : f32
    %86 = vector.broadcast %cst_33 : f32 to vector<16x128xf32>
    %87 = arith.select %11, %86, %85 : vector<16x128xi1>, vector<16x128xf32>
    %88 = vector.extract_strided_slice %26 {offsets = [6, 0], sizes = [1, 128], strides = [1, 1]} : vector<9x128xf32> to vector<1x128xf32>
    %89 = vector.shape_cast %88 : vector<1x128xf32> to vector<128xf32>
    %90 = vector.shape_cast %89 : vector<128xf32> to vector<1x128xf32>
    %91 = vector.broadcast %90 : vector<1x128xf32> to vector<16x128xf32>
    %92 = arith.mulf %84, %91 : vector<16x128xf32>
    %93 = arith.addf %81, %92 : vector<16x128xf32>
    %94 = vector.extract_strided_slice %26 {offsets = [7, 0], sizes = [1, 128], strides = [1, 1]} : vector<9x128xf32> to vector<1x128xf32>
    %95 = vector.shape_cast %94 : vector<1x128xf32> to vector<128xf32>
    %96 = vector.shape_cast %95 : vector<128xf32> to vector<1x128xf32>
    %97 = vector.broadcast %96 : vector<1x128xf32> to vector<16x128xf32>
    %98 = arith.mulf %32, %97 : vector<16x128xf32>
    %99 = arith.addf %93, %98 : vector<16x128xf32>
    %100 = vector.extract_strided_slice %26 {offsets = [8, 0], sizes = [1, 128], strides = [1, 1]} : vector<9x128xf32> to vector<1x128xf32>
    %101 = vector.shape_cast %100 : vector<1x128xf32> to vector<128xf32>
    %102 = vector.shape_cast %101 : vector<128xf32> to vector<1x128xf32>
    %103 = vector.broadcast %102 : vector<1x128xf32> to vector<16x128xf32>
    %104 = arith.mulf %87, %103 : vector<16x128xf32>
    %105 = arith.addf %99, %104 : vector<16x128xf32>
    %c0_34 = arith.constant 0 : index
    %c0_35 = arith.constant 0 : index
    %c0_36 = arith.constant 0 : index
    %106 = vector.load %arg4[%c0_34, %c0_35, %c0_36] : memref<3x128x128xf32, #tpu.memory_space<vmem>>, vector<1x128x128xf32>
    %107 = vector.shape_cast %106 : vector<1x128x128xf32> to vector<128x128xf32>
    %cst_37 = arith.constant dense<0.000000e+00> : vector<16x128xf32>
    %108 = tpu.matmul %105, %107, %cst_37 {dimension_numbers = #tpu.dot_dimension_numbers<[1], [0], [0], [1], [0, 0, 1, 1], [], []>} : vector<16x128xf32>, vector<128x128xf32>, vector<16x128xf32> -> vector<16x128xf32>
    %c2 = arith.constant 2 : index
    %c0_38 = arith.constant 0 : index
    %c0_39 = arith.constant 0 : index
    %109 = vector.load %arg9[%c2, %c0_38, %c0_39] : memref<4x16x128xf32, #tpu.memory_space<vmem>>, vector<1x16x128xf32>
    %110 = vector.shape_cast %109 : vector<1x16x128xf32> to vector<16x128xf32>
    %111 = vector.shape_cast %108 : vector<16x128xf32> to vector<1x16x128xf32>
    tpu.vector_store %arg9[%c2, %c0_38, %c0_39], %111 {strides = array<i32>} : memref<4x16x128xf32, #tpu.memory_space<vmem>>, vector<1x16x128xf32>,
    %c0_40 = arith.constant 0 : index
    %c0_41 = arith.constant 0 : index
    %112 = vector.load %arg5[%c0_40, %c0_41] : memref<8x16xf32, #tpu.memory_space<vmem>>, vector<8x16xf32>
    %cst_42 = arith.constant dense<0.000000e+00> : vector<8x128xf32>
    %113 = tpu.matmul %112, %108, %cst_42 {dimension_numbers = #tpu.dot_dimension_numbers<[1], [0], [0], [1], [0, 0, 1, 1], [], []>} : vector<8x16xf32>, vector<16x128xf32>, vector<8x128xf32> -> vector<8x128xf32>
    %c2_43 = arith.constant 2 : index
    %c0_44 = arith.constant 0 : index
    %c0_45 = arith.constant 0 : index
    %114 = vector.load %arg6[%c2_43, %c0_44, %c0_45] : memref<4x128x32xf32, #tpu.memory_space<vmem>>, vector<1x128x32xf32>
    %115 = vector.shape_cast %114 : vector<1x128x32xf32> to vector<128x32xf32>
    %cst_46 = arith.constant dense<0.000000e+00> : vector<8x32xf32>
    %116 = tpu.matmul %113, %115, %cst_46 {dimension_numbers = #tpu.dot_dimension_numbers<[1], [0], [0], [1], [0, 0, 1, 1], [], []>} : vector<8x128xf32>, vector<128x32xf32>, vector<8x32xf32> -> vector<8x32xf32>
    %117 = arith.addf %24, %116 : vector<8x32xf32>
    %c1 = arith.constant 1 : index
    %c0_47 = arith.constant 0 : index
    %c0_48 = arith.constant 0 : index
    %118 = vector.load %arg3[%c1, %c0_47, %c0_48] : memref<3x9x128xf32, #tpu.memory_space<vmem>>, vector<1x9x128xf32>
    %119 = vector.shape_cast %118 : vector<1x9x128xf32> to vector<9x128xf32>
    %c1_i32_49 = arith.constant 1 : i32
    %120 = tpu.dynamic_rotate %108 by %c1_i32_49 dim 0 : vector<16x128xf32>, i32 -> vector<16x128xf32>
    %cst_50 = arith.constant 0.000000e+00 : f32
    %121 = vector.broadcast %cst_50 : f32 to vector<16x128xf32>
    %122 = arith.select %5, %121, %120 : vector<16x128xi1>, vector<16x128xf32>
    %c15_i32_51 = arith.constant 15 : i32
    %123 = tpu.dynamic_rotate %108 by %c15_i32_51 dim 0 : vector<16x128xf32>, i32 -> vector<16x128xf32>
    %cst_52 = arith.constant 0.000000e+00 : f32
    %124 = vector.broadcast %cst_52 : f32 to vector<16x128xf32>
    %125 = arith.select %7, %124, %123 : vector<16x128xi1>, vector<16x128xf32>
    %cst_53 = arith.constant 0.000000e+00 : f32
    %126 = vector.broadcast %cst_53 : f32 to vector<16x128xf32>
    %c8_i32_54 = arith.constant 8 : i32
    %127 = tpu.dynamic_rotate %122 by %c8_i32_54 dim 1 : vector<16x128xf32>, i32 -> vector<16x128xf32>
    %cst_55 = arith.constant 0.000000e+00 : f32
    %128 = vector.broadcast %cst_55 : f32 to vector<16x128xf32>
    %129 = arith.select %9, %128, %127 : vector<16x128xi1>, vector<16x128xf32>
    %c120_i32_56 = arith.constant 120 : i32
    %130 = tpu.dynamic_rotate %122 by %c120_i32_56 dim 1 : vector<16x128xf32>, i32 -> vector<16x128xf32>
    %cst_57 = arith.constant 0.000000e+00 : f32
    %131 = vector.broadcast %cst_57 : f32 to vector<16x128xf32>
    %132 = arith.select %11, %131, %130 : vector<16x128xi1>, vector<16x128xf32>
    %133 = vector.extract_strided_slice %119 {offsets = [0, 0], sizes = [1, 128], strides = [1, 1]} : vector<9x128xf32> to vector<1x128xf32>
    %134 = vector.shape_cast %133 : vector<1x128xf32> to vector<128xf32>
    %135 = vector.shape_cast %134 : vector<128xf32> to vector<1x128xf32>
    %136 = vector.broadcast %135 : vector<1x128xf32> to vector<16x128xf32>
    %137 = arith.mulf %129, %136 : vector<16x128xf32>
    %138 = arith.addf %126, %137 : vector<16x128xf32>
    %139 = vector.extract_strided_slice %119 {offsets = [1, 0], sizes = [1, 128], strides = [1, 1]} : vector<9x128xf32> to vector<1x128xf32>
    %140 = vector.shape_cast %139 : vector<1x128xf32> to vector<128xf32>
    %141 = vector.shape_cast %140 : vector<128xf32> to vector<1x128xf32>
    %142 = vector.broadcast %141 : vector<1x128xf32> to vector<16x128xf32>
    %143 = arith.mulf %122, %142 : vector<16x128xf32>
    %144 = arith.addf %138, %143 : vector<16x128xf32>
    %145 = vector.extract_strided_slice %119 {offsets = [2, 0], sizes = [1, 128], strides = [1, 1]} : vector<9x128xf32> to vector<1x128xf32>
    %146 = vector.shape_cast %145 : vector<1x128xf32> to vector<128xf32>
    %147 = vector.shape_cast %146 : vector<128xf32> to vector<1x128xf32>
    %148 = vector.broadcast %147 : vector<1x128xf32> to vector<16x128xf32>
    %149 = arith.mulf %132, %148 : vector<16x128xf32>
    %150 = arith.addf %144, %149 : vector<16x128xf32>
    %c8_i32_58 = arith.constant 8 : i32
    %151 = tpu.dynamic_rotate %108 by %c8_i32_58 dim 1 : vector<16x128xf32>, i32 -> vector<16x128xf32>
    %cst_59 = arith.constant 0.000000e+00 : f32
    %152 = vector.broadcast %cst_59 : f32 to vector<16x128xf32>
    %153 = arith.select %9, %152, %151 : vector<16x128xi1>, vector<16x128xf32>
    %c120_i32_60 = arith.constant 120 : i32
    %154 = tpu.dynamic_rotate %108 by %c120_i32_60 dim 1 : vector<16x128xf32>, i32 -> vector<16x128xf32>
    %cst_61 = arith.constant 0.000000e+00 : f32
    %155 = vector.broadcast %cst_61 : f32 to vector<16x128xf32>
    %156 = arith.select %11, %155, %154 : vector<16x128xi1>, vector<16x128xf32>
    %157 = vector.extract_strided_slice %119 {offsets = [3, 0], sizes = [1, 128], strides = [1, 1]} : vector<9x128xf32> to vector<1x128xf32>
    %158 = vector.shape_cast %157 : vector<1x128xf32> to vector<128xf32>
    %159 = vector.shape_cast %158 : vector<128xf32> to vector<1x128xf32>
    %160 = vector.broadcast %159 : vector<1x128xf32> to vector<16x128xf32>
    %161 = arith.mulf %153, %160 : vector<16x128xf32>
    %162 = arith.addf %150, %161 : vector<16x128xf32>
    %163 = vector.extract_strided_slice %119 {offsets = [4, 0], sizes = [1, 128], strides = [1, 1]} : vector<9x128xf32> to vector<1x128xf32>
    %164 = vector.shape_cast %163 : vector<1x128xf32> to vector<128xf32>
    %165 = vector.shape_cast %164 : vector<128xf32> to vector<1x128xf32>
    %166 = vector.broadcast %165 : vector<1x128xf32> to vector<16x128xf32>
    %167 = arith.mulf %108, %166 : vector<16x128xf32>
    %168 = arith.addf %162, %167 : vector<16x128xf32>
    %169 = vector.extract_strided_slice %119 {offsets = [5, 0], sizes = [1, 128], strides = [1, 1]} : vector<9x128xf32> to vector<1x128xf32>
    %170 = vector.shape_cast %169 : vector<1x128xf32> to vector<128xf32>
    %171 = vector.shape_cast %170 : vector<128xf32> to vector<1x128xf32>
    %172 = vector.broadcast %171 : vector<1x128xf32> to vector<16x128xf32>
    %173 = arith.mulf %156, %172 : vector<16x128xf32>
    %174 = arith.addf %168, %173 : vector<16x128xf32>
    %c8_i32_62 = arith.constant 8 : i32
    %175 = tpu.dynamic_rotate %125 by %c8_i32_62 dim 1 : vector<16x128xf32>, i32 -> vector<16x128xf32>
    %cst_63 = arith.constant 0.000000e+00 : f32
    %176 = vector.broadcast %cst_63 : f32 to vector<16x128xf32>
    %177 = arith.select %9, %176, %175 : vector<16x128xi1>, vector<16x128xf32>
    %c120_i32_64 = arith.constant 120 : i32
    %178 = tpu.dynamic_rotate %125 by %c120_i32_64 dim 1 : vector<16x128xf32>, i32 -> vector<16x128xf32>
    %cst_65 = arith.constant 0.000000e+00 : f32
    %179 = vector.broadcast %cst_65 : f32 to vector<16x128xf32>
    %180 = arith.select %11, %179, %178 : vector<16x128xi1>, vector<16x128xf32>
    %181 = vector.extract_strided_slice %119 {offsets = [6, 0], sizes = [1, 128], strides = [1, 1]} : vector<9x128xf32> to vector<1x128xf32>
    %182 = vector.shape_cast %181 : vector<1x128xf32> to vector<128xf32>
    %183 = vector.shape_cast %182 : vector<128xf32> to vector<1x128xf32>
    %184 = vector.broadcast %183 : vector<1x128xf32> to vector<16x128xf32>
    %185 = arith.mulf %177, %184 : vector<16x128xf32>
    %186 = arith.addf %174, %185 : vector<16x128xf32>
    %187 = vector.extract_strided_slice %119 {offsets = [7, 0], sizes = [1, 128], strides = [1, 1]} : vector<9x128xf32> to vector<1x128xf32>
    %188 = vector.shape_cast %187 : vector<1x128xf32> to vector<128xf32>
    %189 = vector.shape_cast %188 : vector<128xf32> to vector<1x128xf32>
    %190 = vector.broadcast %189 : vector<1x128xf32> to vector<16x128xf32>
    %191 = arith.mulf %125, %190 : vector<16x128xf32>
    %192 = arith.addf %186, %191 : vector<16x128xf32>
    %193 = vector.extract_strided_slice %119 {offsets = [8, 0], sizes = [1, 128], strides = [1, 1]} : vector<9x128xf32> to vector<1x128xf32>
    %194 = vector.shape_cast %193 : vector<1x128xf32> to vector<128xf32>
    %195 = vector.shape_cast %194 : vector<128xf32> to vector<1x128xf32>
    %196 = vector.broadcast %195 : vector<1x128xf32> to vector<16x128xf32>
    %197 = arith.mulf %180, %196 : vector<16x128xf32>
    %198 = arith.addf %192, %197 : vector<16x128xf32>
    %c1_66 = arith.constant 1 : index
    %c0_67 = arith.constant 0 : index
    %c0_68 = arith.constant 0 : index
    %199 = vector.load %arg4[%c1_66, %c0_67, %c0_68] : memref<3x128x128xf32, #tpu.memory_space<vmem>>, vector<1x128x128xf32>
    %200 = vector.shape_cast %199 : vector<1x128x128xf32> to vector<128x128xf32>
    %cst_69 = arith.constant dense<0.000000e+00> : vector<16x128xf32>
    %201 = tpu.matmul %198, %200, %cst_69 {dimension_numbers = #tpu.dot_dimension_numbers<[1], [0], [0], [1], [0, 0, 1, 1], [], []>} : vector<16x128xf32>, vector<128x128xf32>, vector<16x128xf32> -> vector<16x128xf32>
    %c1_70 = arith.constant 1 : index
    %c0_71 = arith.constant 0 : index
    %c0_72 = arith.constant 0 : index
    %202 = vector.load %arg9[%c1_70, %c0_71, %c0_72] : memref<4x16x128xf32, #tpu.memory_space<vmem>>, vector<1x16x128xf32>
    %203 = vector.shape_cast %202 : vector<1x16x128xf32> to vector<16x128xf32>
    %204 = vector.shape_cast %201 : vector<16x128xf32> to vector<1x16x128xf32>
    tpu.vector_store %arg9[%c1_70, %c0_71, %c0_72], %204 {strides = array<i32>} : memref<4x16x128xf32, #tpu.memory_space<vmem>>, vector<1x16x128xf32>,
    %c0_73 = arith.constant 0 : index
    %c0_74 = arith.constant 0 : index
    %205 = vector.load %arg5[%c0_73, %c0_74] : memref<8x16xf32, #tpu.memory_space<vmem>>, vector<8x16xf32>
    %cst_75 = arith.constant dense<0.000000e+00> : vector<8x128xf32>
    %206 = tpu.matmul %205, %201, %cst_75 {dimension_numbers = #tpu.dot_dimension_numbers<[1], [0], [0], [1], [0, 0, 1, 1], [], []>} : vector<8x16xf32>, vector<16x128xf32>, vector<8x128xf32> -> vector<8x128xf32>
    %c1_76 = arith.constant 1 : index
    %c0_77 = arith.constant 0 : index
    %c0_78 = arith.constant 0 : index
    %207 = vector.load %arg6[%c1_76, %c0_77, %c0_78] : memref<4x128x32xf32, #tpu.memory_space<vmem>>, vector<1x128x32xf32>
    %208 = vector.shape_cast %207 : vector<1x128x32xf32> to vector<128x32xf32>
    %cst_79 = arith.constant dense<0.000000e+00> : vector<8x32xf32>
    %209 = tpu.matmul %206, %208, %cst_79 {dimension_numbers = #tpu.dot_dimension_numbers<[1], [0], [0], [1], [0, 0, 1, 1], [], []>} : vector<8x128xf32>, vector<128x32xf32>, vector<8x32xf32> -> vector<8x32xf32>
    %210 = arith.addf %117, %209 : vector<8x32xf32>
    %c2_80 = arith.constant 2 : index
    %c0_81 = arith.constant 0 : index
    %c0_82 = arith.constant 0 : index
    %211 = vector.load %arg3[%c2_80, %c0_81, %c0_82] : memref<3x9x128xf32, #tpu.memory_space<vmem>>, vector<1x9x128xf32>
    %212 = vector.shape_cast %211 : vector<1x9x128xf32> to vector<9x128xf32>
    %c1_i32_83 = arith.constant 1 : i32
    %213 = tpu.dynamic_rotate %201 by %c1_i32_83 dim 0 : vector<16x128xf32>, i32 -> vector<16x128xf32>
    %cst_84 = arith.constant 0.000000e+00 : f32
    %214 = vector.broadcast %cst_84 : f32 to vector<16x128xf32>
    %215 = arith.select %5, %214, %213 : vector<16x128xi1>, vector<16x128xf32>
    %c15_i32_85 = arith.constant 15 : i32
    %216 = tpu.dynamic_rotate %201 by %c15_i32_85 dim 0 : vector<16x128xf32>, i32 -> vector<16x128xf32>
    %cst_86 = arith.constant 0.000000e+00 : f32
    %217 = vector.broadcast %cst_86 : f32 to vector<16x128xf32>
    %218 = arith.select %7, %217, %216 : vector<16x128xi1>, vector<16x128xf32>
    %cst_87 = arith.constant 0.000000e+00 : f32
    %219 = vector.broadcast %cst_87 : f32 to vector<16x128xf32>
    %c8_i32_88 = arith.constant 8 : i32
    %220 = tpu.dynamic_rotate %215 by %c8_i32_88 dim 1 : vector<16x128xf32>, i32 -> vector<16x128xf32>
    %cst_89 = arith.constant 0.000000e+00 : f32
    %221 = vector.broadcast %cst_89 : f32 to vector<16x128xf32>
    %222 = arith.select %9, %221, %220 : vector<16x128xi1>, vector<16x128xf32>
    %c120_i32_90 = arith.constant 120 : i32
    %223 = tpu.dynamic_rotate %215 by %c120_i32_90 dim 1 : vector<16x128xf32>, i32 -> vector<16x128xf32>
    %cst_91 = arith.constant 0.000000e+00 : f32
    %224 = vector.broadcast %cst_91 : f32 to vector<16x128xf32>
    %225 = arith.select %11, %224, %223 : vector<16x128xi1>, vector<16x128xf32>
    %226 = vector.extract_strided_slice %212 {offsets = [0, 0], sizes = [1, 128], strides = [1, 1]} : vector<9x128xf32> to vector<1x128xf32>
    %227 = vector.shape_cast %226 : vector<1x128xf32> to vector<128xf32>
    %228 = vector.shape_cast %227 : vector<128xf32> to vector<1x128xf32>
    %229 = vector.broadcast %228 : vector<1x128xf32> to vector<16x128xf32>
    %230 = arith.mulf %222, %229 : vector<16x128xf32>
    %231 = arith.addf %219, %230 : vector<16x128xf32>
    %232 = vector.extract_strided_slice %212 {offsets = [1, 0], sizes = [1, 128], strides = [1, 1]} : vector<9x128xf32> to vector<1x128xf32>
    %233 = vector.shape_cast %232 : vector<1x128xf32> to vector<128xf32>
    %234 = vector.shape_cast %233 : vector<128xf32> to vector<1x128xf32>
    %235 = vector.broadcast %234 : vector<1x128xf32> to vector<16x128xf32>
    %236 = arith.mulf %215, %235 : vector<16x128xf32>
    %237 = arith.addf %231, %236 : vector<16x128xf32>
    %238 = vector.extract_strided_slice %212 {offsets = [2, 0], sizes = [1, 128], strides = [1, 1]} : vector<9x128xf32> to vector<1x128xf32>
    %239 = vector.shape_cast %238 : vector<1x128xf32> to vector<128xf32>
    %240 = vector.shape_cast %239 : vector<128xf32> to vector<1x128xf32>
    %241 = vector.broadcast %240 : vector<1x128xf32> to vector<16x128xf32>
    %242 = arith.mulf %225, %241 : vector<16x128xf32>
    %243 = arith.addf %237, %242 : vector<16x128xf32>
    %c8_i32_92 = arith.constant 8 : i32
    %244 = tpu.dynamic_rotate %201 by %c8_i32_92 dim 1 : vector<16x128xf32>, i32 -> vector<16x128xf32>
    %cst_93 = arith.constant 0.000000e+00 : f32
    %245 = vector.broadcast %cst_93 : f32 to vector<16x128xf32>
    %246 = arith.select %9, %245, %244 : vector<16x128xi1>, vector<16x128xf32>
    %c120_i32_94 = arith.constant 120 : i32
    %247 = tpu.dynamic_rotate %201 by %c120_i32_94 dim 1 : vector<16x128xf32>, i32 -> vector<16x128xf32>
    %cst_95 = arith.constant 0.000000e+00 : f32
    %248 = vector.broadcast %cst_95 : f32 to vector<16x128xf32>
    %249 = arith.select %11, %248, %247 : vector<16x128xi1>, vector<16x128xf32>
    %250 = vector.extract_strided_slice %212 {offsets = [3, 0], sizes = [1, 128], strides = [1, 1]} : vector<9x128xf32> to vector<1x128xf32>
    %251 = vector.shape_cast %250 : vector<1x128xf32> to vector<128xf32>
    %252 = vector.shape_cast %251 : vector<128xf32> to vector<1x128xf32>
    %253 = vector.broadcast %252 : vector<1x128xf32> to vector<16x128xf32>
    %254 = arith.mulf %246, %253 : vector<16x128xf32>
    %255 = arith.addf %243, %254 : vector<16x128xf32>
    %256 = vector.extract_strided_slice %212 {offsets = [4, 0], sizes = [1, 128], strides = [1, 1]} : vector<9x128xf32> to vector<1x128xf32>
    %257 = vector.shape_cast %256 : vector<1x128xf32> to vector<128xf32>
    %258 = vector.shape_cast %257 : vector<128xf32> to vector<1x128xf32>
    %259 = vector.broadcast %258 : vector<1x128xf32> to vector<16x128xf32>
    %260 = arith.mulf %201, %259 : vector<16x128xf32>
    %261 = arith.addf %255, %260 : vector<16x128xf32>
    %262 = vector.extract_strided_slice %212 {offsets = [5, 0], sizes = [1, 128], strides = [1, 1]} : vector<9x128xf32> to vector<1x128xf32>
    %263 = vector.shape_cast %262 : vector<1x128xf32> to vector<128xf32>
    %264 = vector.shape_cast %263 : vector<128xf32> to vector<1x128xf32>
    %265 = vector.broadcast %264 : vector<1x128xf32> to vector<16x128xf32>
    %266 = arith.mulf %249, %265 : vector<16x128xf32>
    %267 = arith.addf %261, %266 : vector<16x128xf32>
    %c8_i32_96 = arith.constant 8 : i32
    %268 = tpu.dynamic_rotate %218 by %c8_i32_96 dim 1 : vector<16x128xf32>, i32 -> vector<16x128xf32>
    %cst_97 = arith.constant 0.000000e+00 : f32
    %269 = vector.broadcast %cst_97 : f32 to vector<16x128xf32>
    %270 = arith.select %9, %269, %268 : vector<16x128xi1>, vector<16x128xf32>
    %c120_i32_98 = arith.constant 120 : i32
    %271 = tpu.dynamic_rotate %218 by %c120_i32_98 dim 1 : vector<16x128xf32>, i32 -> vector<16x128xf32>
    %cst_99 = arith.constant 0.000000e+00 : f32
    %272 = vector.broadcast %cst_99 : f32 to vector<16x128xf32>
    %273 = arith.select %11, %272, %271 : vector<16x128xi1>, vector<16x128xf32>
    %274 = vector.extract_strided_slice %212 {offsets = [6, 0], sizes = [1, 128], strides = [1, 1]} : vector<9x128xf32> to vector<1x128xf32>
    %275 = vector.shape_cast %274 : vector<1x128xf32> to vector<128xf32>
    %276 = vector.shape_cast %275 : vector<128xf32> to vector<1x128xf32>
    %277 = vector.broadcast %276 : vector<1x128xf32> to vector<16x128xf32>
    %278 = arith.mulf %270, %277 : vector<16x128xf32>
    %279 = arith.addf %267, %278 : vector<16x128xf32>
    %280 = vector.extract_strided_slice %212 {offsets = [7, 0], sizes = [1, 128], strides = [1, 1]} : vector<9x128xf32> to vector<1x128xf32>
    %281 = vector.shape_cast %280 : vector<1x128xf32> to vector<128xf32>
    %282 = vector.shape_cast %281 : vector<128xf32> to vector<1x128xf32>
    %283 = vector.broadcast %282 : vector<1x128xf32> to vector<16x128xf32>
    %284 = arith.mulf %218, %283 : vector<16x128xf32>
    %285 = arith.addf %279, %284 : vector<16x128xf32>
    %286 = vector.extract_strided_slice %212 {offsets = [8, 0], sizes = [1, 128], strides = [1, 1]} : vector<9x128xf32> to vector<1x128xf32>
    %287 = vector.shape_cast %286 : vector<1x128xf32> to vector<128xf32>
    %288 = vector.shape_cast %287 : vector<128xf32> to vector<1x128xf32>
    %289 = vector.broadcast %288 : vector<1x128xf32> to vector<16x128xf32>
    %290 = arith.mulf %273, %289 : vector<16x128xf32>
    %291 = arith.addf %285, %290 : vector<16x128xf32>
    %c2_100 = arith.constant 2 : index
    %c0_101 = arith.constant 0 : index
    %c0_102 = arith.constant 0 : index
    %292 = vector.load %arg4[%c2_100, %c0_101, %c0_102] : memref<3x128x128xf32, #tpu.memory_space<vmem>>, vector<1x128x128xf32>
    %293 = vector.shape_cast %292 : vector<1x128x128xf32> to vector<128x128xf32>
    %cst_103 = arith.constant dense<0.000000e+00> : vector<16x128xf32>
    %294 = tpu.matmul %291, %293, %cst_103 {dimension_numbers = #tpu.dot_dimension_numbers<[1], [0], [0], [1], [0, 0, 1, 1], [], []>} : vector<16x128xf32>, vector<128x128xf32>, vector<16x128xf32> -> vector<16x128xf32>
    %c0_104 = arith.constant 0 : index
    %c0_105 = arith.constant 0 : index
    %c0_106 = arith.constant 0 : index
    %295 = vector.load %arg9[%c0_104, %c0_105, %c0_106] : memref<4x16x128xf32, #tpu.memory_space<vmem>>, vector<1x16x128xf32>
    %296 = vector.shape_cast %295 : vector<1x16x128xf32> to vector<16x128xf32>
    %297 = vector.shape_cast %294 : vector<16x128xf32> to vector<1x16x128xf32>
    tpu.vector_store %arg9[%c0_104, %c0_105, %c0_106], %297 {strides = array<i32>} : memref<4x16x128xf32, #tpu.memory_space<vmem>>, vector<1x16x128xf32>,
    %c0_107 = arith.constant 0 : index
    %c0_108 = arith.constant 0 : index
    %298 = vector.load %arg5[%c0_107, %c0_108] : memref<8x16xf32, #tpu.memory_space<vmem>>, vector<8x16xf32>
    %cst_109 = arith.constant dense<0.000000e+00> : vector<8x128xf32>
    %299 = tpu.matmul %298, %294, %cst_109 {dimension_numbers = #tpu.dot_dimension_numbers<[1], [0], [0], [1], [0, 0, 1, 1], [], []>} : vector<8x16xf32>, vector<16x128xf32>, vector<8x128xf32> -> vector<8x128xf32>
    %c0_110 = arith.constant 0 : index
    %c0_111 = arith.constant 0 : index
    %c0_112 = arith.constant 0 : index
    %300 = vector.load %arg6[%c0_110, %c0_111, %c0_112] : memref<4x128x32xf32, #tpu.memory_space<vmem>>, vector<1x128x32xf32>
    %301 = vector.shape_cast %300 : vector<1x128x32xf32> to vector<128x32xf32>
    %cst_113 = arith.constant dense<0.000000e+00> : vector<8x32xf32>
    %302 = tpu.matmul %299, %301, %cst_113 {dimension_numbers = #tpu.dot_dimension_numbers<[1], [0], [0], [1], [0, 0, 1, 1], [], []>} : vector<8x128xf32>, vector<128x32xf32>, vector<8x32xf32> -> vector<8x32xf32>
    %303 = arith.addf %210, %302 : vector<8x32xf32>
    %304 = arith.negf %303 : vector<8x32xf32>
    %305 = math.exp %304 : vector<8x32xf32>
    %cst_114 = arith.constant 1.000000e+00 : f32
    %306 = vector.broadcast %cst_114 : f32 to vector<8x32xf32>
    %307 = arith.addf %306, %305 : vector<8x32xf32>
    %308 = arith.divf %306, %307 : vector<8x32xf32>
    %c0_115 = arith.constant 0 : index
    %c0_116 = arith.constant 0 : index
    %309 = vector.load %arg7[%c0_115, %c0_116] : memref<32x512xf32, #tpu.memory_space<vmem>>, vector<32x512xf32>
    %cst_117 = arith.constant dense<0.000000e+00> : vector<8x512xf32>
    %310 = tpu.matmul %308, %309, %cst_117 {dimension_numbers = #tpu.dot_dimension_numbers<[1], [0], [0], [1], [0, 0, 1, 1], [], []>} : vector<8x32xf32>, vector<32x512xf32>, vector<8x512xf32> -> vector<8x512xf32>
    %c0_118 = arith.constant 0 : index
    %c0_119 = arith.constant 0 : index
    %311 = vector.load %arg8[%c0_118, %c0_119] : memref<16x8xf32, #tpu.memory_space<vmem>>, vector<16x8xf32>
    %cst_120 = arith.constant dense<0.000000e+00> : vector<16x512xf32>
    %312 = tpu.matmul %311, %310, %cst_120 {dimension_numbers = #tpu.dot_dimension_numbers<[1], [0], [0], [1], [0, 0, 1, 1], [], []>} : vector<16x8xf32>, vector<8x512xf32>, vector<16x512xf32> -> vector<16x512xf32>
    %c0_121 = arith.constant 0 : index
    %c0_122 = arith.constant 0 : index
    %c0_123 = arith.constant 0 : index
    %313 = vector.load %arg9[%c0_121, %c0_122, %c0_123] : memref<4x16x128xf32, #tpu.memory_space<vmem>>, vector<1x16x128xf32>
    %314 = vector.shape_cast %313 : vector<1x16x128xf32> to vector<16x128xf32>
    %315 = vector.extract_strided_slice %312 {offsets = [0, 0], sizes = [16, 128], strides = [1, 1]} : vector<16x512xf32> to vector<16x128xf32>
    %316 = arith.mulf %314, %315 : vector<16x128xf32>
    %c0_124 = arith.constant 0 : index
    %c0_125 = arith.constant 0 : index
    %c0_126 = arith.constant 0 : index
    %317 = vector.load %arg9[%c0_124, %c0_125, %c0_126] : memref<4x16x128xf32, #tpu.memory_space<vmem>>, vector<1x16x128xf32>
    %318 = vector.shape_cast %317 : vector<1x16x128xf32> to vector<16x128xf32>
    %319 = vector.shape_cast %316 : vector<16x128xf32> to vector<1x16x128xf32>
    tpu.vector_store %arg9[%c0_124, %c0_125, %c0_126], %319 {strides = array<i32>} : memref<4x16x128xf32, #tpu.memory_space<vmem>>, vector<1x16x128xf32>,
    %c1_127 = arith.constant 1 : index
    %c0_128 = arith.constant 0 : index
    %c0_129 = arith.constant 0 : index
    %320 = vector.load %arg9[%c1_127, %c0_128, %c0_129] : memref<4x16x128xf32, #tpu.memory_space<vmem>>, vector<1x16x128xf32>
    %321 = vector.shape_cast %320 : vector<1x16x128xf32> to vector<16x128xf32>
    %322 = vector.extract_strided_slice %312 {offsets = [0, 128], sizes = [16, 128], strides = [1, 1]} : vector<16x512xf32> to vector<16x128xf32>
    %323 = arith.mulf %321, %322 : vector<16x128xf32>
    %c1_130 = arith.constant 1 : index
    %c0_131 = arith.constant 0 : index
    %c0_132 = arith.constant 0 : index
    %324 = vector.load %arg9[%c1_130, %c0_131, %c0_132] : memref<4x16x128xf32, #tpu.memory_space<vmem>>, vector<1x16x128xf32>
    %325 = vector.shape_cast %324 : vector<1x16x128xf32> to vector<16x128xf32>
    %326 = vector.shape_cast %323 : vector<16x128xf32> to vector<1x16x128xf32>
    tpu.vector_store %arg9[%c1_130, %c0_131, %c0_132], %326 {strides = array<i32>} : memref<4x16x128xf32, #tpu.memory_space<vmem>>, vector<1x16x128xf32>,
    %c2_133 = arith.constant 2 : index
    %c0_134 = arith.constant 0 : index
    %c0_135 = arith.constant 0 : index
    %327 = vector.load %arg9[%c2_133, %c0_134, %c0_135] : memref<4x16x128xf32, #tpu.memory_space<vmem>>, vector<1x16x128xf32>
    %328 = vector.shape_cast %327 : vector<1x16x128xf32> to vector<16x128xf32>
    %329 = vector.extract_strided_slice %312 {offsets = [0, 256], sizes = [16, 128], strides = [1, 1]} : vector<16x512xf32> to vector<16x128xf32>
    %330 = arith.mulf %328, %329 : vector<16x128xf32>
    %c2_136 = arith.constant 2 : index
    %c0_137 = arith.constant 0 : index
    %c0_138 = arith.constant 0 : index
    %331 = vector.load %arg9[%c2_136, %c0_137, %c0_138] : memref<4x16x128xf32, #tpu.memory_space<vmem>>, vector<1x16x128xf32>
    %332 = vector.shape_cast %331 : vector<1x16x128xf32> to vector<16x128xf32>
    %333 = vector.shape_cast %330 : vector<16x128xf32> to vector<1x16x128xf32>
    tpu.vector_store %arg9[%c2_136, %c0_137, %c0_138], %333 {strides = array<i32>} : memref<4x16x128xf32, #tpu.memory_space<vmem>>, vector<1x16x128xf32>,
    %c3_139 = arith.constant 3 : index
    %c0_140 = arith.constant 0 : index
    %c0_141 = arith.constant 0 : index
    %334 = vector.load %arg9[%c3_139, %c0_140, %c0_141] : memref<4x16x128xf32, #tpu.memory_space<vmem>>, vector<1x16x128xf32>
    %335 = vector.shape_cast %334 : vector<1x16x128xf32> to vector<16x128xf32>
    %336 = vector.extract_strided_slice %312 {offsets = [0, 384], sizes = [16, 128], strides = [1, 1]} : vector<16x512xf32> to vector<16x128xf32>
    %337 = arith.mulf %335, %336 : vector<16x128xf32>
    %c3_142 = arith.constant 3 : index
    %c0_143 = arith.constant 0 : index
    %c0_144 = arith.constant 0 : index
    %338 = vector.load %arg9[%c3_142, %c0_143, %c0_144] : memref<4x16x128xf32, #tpu.memory_space<vmem>>, vector<1x16x128xf32>
    %339 = vector.shape_cast %338 : vector<1x16x128xf32> to vector<16x128xf32>
    %340 = vector.shape_cast %337 : vector<16x128xf32> to vector<1x16x128xf32>
    tpu.vector_store %arg9[%c3_142, %c0_143, %c0_144], %340 {strides = array<i32>} : memref<4x16x128xf32, #tpu.memory_space<vmem>>, vector<1x16x128xf32>,
    return
  }
  func.func @transform_0(%arg0: i32) -> (i32, i32) {
    %c0_i32 = arith.constant 0 : i32
    %c0_i32_0 = arith.constant 0 : i32
    return %arg0, %c0_i32 : i32, i32
  }
  func.func @transform_1(%arg0: i32) -> (i32, i32) {
    %c0_i32 = arith.constant 0 : i32
    %c0_i32_0 = arith.constant 0 : i32
    %c0_i32_1 = arith.constant 0 : i32
    return %c0_i32, %c0_i32_0 : i32, i32
  }
  func.func @transform_2(%arg0: i32) -> (i32, i32, i32) {
    %c0_i32 = arith.constant 0 : i32
    %c0_i32_0 = arith.constant 0 : i32
    %c0_i32_1 = arith.constant 0 : i32
    %c0_i32_2 = arith.constant 0 : i32
    return %c0_i32, %c0_i32_0, %c0_i32_1 : i32, i32, i32
  }
  func.func @transform_3(%arg0: i32) -> (i32, i32, i32) {
    %c0_i32 = arith.constant 0 : i32
    %c0_i32_0 = arith.constant 0 : i32
    %c0_i32_1 = arith.constant 0 : i32
    %c0_i32_2 = arith.constant 0 : i32
    return %c0_i32, %c0_i32_0, %c0_i32_1 : i32, i32, i32
  }
  func.func @transform_4(%arg0: i32) -> (i32, i32) {
    %c0_i32 = arith.constant 0 : i32
    %c0_i32_0 = arith.constant 0 : i32
    %c0_i32_1 = arith.constant 0 : i32
    return %c0_i32, %c0_i32_0 : i32, i32
  }
  func.func @transform_5(%arg0: i32) -> (i32, i32, i32) {
    %c0_i32 = arith.constant 0 : i32
    %c0_i32_0 = arith.constant 0 : i32
    %c0_i32_1 = arith.constant 0 : i32
    %c0_i32_2 = arith.constant 0 : i32
    return %c0_i32, %c0_i32_0, %c0_i32_1 : i32, i32, i32
  }
  func.func @transform_6(%arg0: i32) -> (i32, i32) {
    %c0_i32 = arith.constant 0 : i32
    %c0_i32_0 = arith.constant 0 : i32
    %c0_i32_1 = arith.constant 0 : i32
    return %c0_i32, %c0_i32_0 : i32, i32
  }
  func.func @transform_7(%arg0: i32) -> (i32, i32) {
    %c0_i32 = arith.constant 0 : i32
    %c0_i32_0 = arith.constant 0 : i32
    %c0_i32_1 = arith.constant 0 : i32
    return %c0_i32, %c0_i32_0 : i32, i32
  }
  func.func @transform_8(%arg0: i32) -> (i32, i32, i32) {
    %c0_i32 = arith.constant 0 : i32
    %c0_i32_0 = arith.constant 0 : i32
    %c0_i32_1 = arith.constant 0 : i32
    return %c0_i32, %arg0, %c0_i32_0 : i32, i32, i32
  }
}

</mosaic_0001>

<bundles_post_ra>
// kernel: our_conv2d_forward.1
= control target key start
LH: loop header
LB: loop body
LE: loop exit
PB: predicated region body
PF: predicated region fallthrough
CT: control target
= control target key end

     0   :  { %s3102_s27 = smov 0   ;;  %s3104_s28 = smov 0   ;;  %s4012_s0 = inlined_call_operand.vmem [shape: f32[32,64], index: 0, kind: input, shape index: {}]   ;;  %s4013_s1 = inlined_call_operand.vmem [shape: f32[64,128], index: 1, kind: input, shape index: {}]   ;;  %s4014_s2 = inlined_call_operand.vmem [shape: f32[3,9,128], index: 2, kind: input, shape index: {}]   ;;  %s4015_s3 = inlined_call_operand.vmem [shape: f32[3,128,128], index: 3, kind: input, shape index: {}]   ;;  %s4016_s4 = inlined_call_operand.vmem [shape: f32[8,16], index: 4, kind: input, shape index: {}]   ;;  %s4017_s5 = inlined_call_operand.vmem [shape: f32[4,128,32], index: 5, kind: input, shape index: {}]   ;;  %s4018_s6 = inlined_call_operand.vmem [shape: f32[32,512], index: 6, kind: input, shape index: {}]   ;;  %s4019_s7 = inlined_call_operand.vmem [shape: f32[16,8], index: 7, kind: input, shape index: {}]   ;;  %s4020_s8 = inlined_call_operand.vmem [shape: f32[4,32,128], index: 8, kind: output, shape index: {}]  }
   0x1   :  { %s3106_s29 = smov 0  }
   0x2 LB: > { %s3115_s30 = sadd.s32 4294967295, %s3050_s29   ;;  %s3117_s9 = sadd.s32 1, %s3050_s29   ;;  %s3050_s29 = sphi %s3106_s29, %s4028_s29   ;;  %s3046_s28 = sphi %s3104_s28, %s4027_s28   ;;  %s3042_s27 = sphi %s3102_s27, %s4026_s27  }
   0x3   : > { %s195_s10 = ssub.s32 %s3050_s29, %s3117_s9  ;;  %s198_s11 = sadd.s32 1, %s3046_s28 }
   0x4   : > { %p196_p0 = scmp.eq.s32.totalorder %s195_s10, 0  ;;  %p208_p1 = scmp.ne.s32.totalorder %s3046_s28, %s3042_s27 }
   0x5   : > { %p209_p2 = scmp.eq.s32.totalorder %s3115_s30, 1  ;;  %p2189_p3 = scmp.ge.s32.totalorder %s3050_s29, 1 }
   0x6   : > { %s3125_s12 = scalar_select %p196_p0, %s3046_s28, %s198_s11  }
   0x7   : > { %p3127_p4 = por %p209_p2, %p208_p1  ;;  %p263_p5 = scmp.lt.s32.totalorder %s3050_s29, 3 }
   0x9   : > { %p264_p6 = pnand %p2189_p3, %p263_p5 }
   0xa   : > { %v318_v0 = vld [vmem:[%s4013_s1] sm:$0xff] (!%p264_p6)  ;;  %v319_v1 = vld [vmem:[%s4013_s1 + $0x8] sm:$0xff] (!%p264_p6)  ;;  %v320_v2 = vld [vmem:[%s4013_s1 + $0x10] sm:$0xff] (!%p264_p6)  ;;  %s2191_s20 = sshll.u32 (!%p264_p6), %s3115_s30, 1  ;;  %vm326_vm0 = vcmask (!%p264_p6), 523264   ;;  %v3052_v14 = vmov (!%p264_p6), 0.0|0.0   ;;  %v303_v16 = vlaneseq (!%p264_p6) }
   0xb   : > { %267 = sbr.rel (%p264_p6) target bundleno = 2213 (0x8a5), region = 52  ;;  %v2753_v3 = vpack.c.bf16 (!%p264_p6), %v319_v1, %v318_v0  ;;  %v321_v4 = vld [vmem:[%s4013_s1 + $0x18] sm:$0xff] (!%p264_p6)  ;;  %p297_p7 = scmp.lt.s32.totalorder (!%p264_p6), %s2191_s20, 3  ;;  %v322_v6 = vld [vmem:[%s4013_s1 + $0x20] sm:$0xff] (!%p264_p6)  ;;  %v323_v7 = vld [vmem:[%s4013_s1 + $0x28] sm:$0xff] (!%p264_p6)  ;;  %2769 = vmatprep.subr.bf16.mxu1 (!%p264_p6), %v3052_v14  ;;  %vm3053_vm1 = vmmov (!%p264_p6), 0  }
   0xc   : > { %v2757_v5 = vpack.c.bf16 (!%p264_p6), %v321_v4, %v320_v2  ;;  %v2761_v8 = vpack.c.bf16 (!%p264_p6), %v323_v7, %v322_v6  ;;  %v324_v9 = vld [vmem:[%s4013_s1 + $0x30] sm:$0xff] (!%p264_p6)  ;;  %v325_v10 = vld [vmem:[%s4013_s1 + $0x38] sm:$0xff] (!%p264_p6)  ;;  %v3054_v15 = vmov (!%p264_p6), 0.0   ;;  %v3166_v17 = vshrl.u32 (!%p264_p6), %v303_v16, 7  ;;  %v627_v18 = vld [vmem:[%s4015_s3] sm:$0xff] (!%p264_p6)  ;;  %s3055_s11 = smov (!%p264_p6), 120  }
   0xd   : > { %2754 = vmatprep.subr.bf16.mxu0 (!%p264_p6), %v2753_v3  ;;  %v2765_v12 = vpack.c.bf16 (!%p264_p6), %v325_v10, %v324_v9  ;;  %2484 = vmatprep.mubr.msk.f32.mxu1 (!%p264_p6), %vm3053_vm1, %v3054_v15  ;;  %v628_v19 = vld [vmem:[%s4015_s3 + $0x8] sm:$0xff] (!%p264_p6)  ;;  %vm412_vm4 = vcmask (!%p264_p6), 130048   ;;  %v629_v29 = vld [vmem:[%s4015_s3 + $0x10] sm:$0xff] (!%p264_p6)  ;;  %v630_v30 = vld [vmem:[%s4015_s3 + $0x18] sm:$0xff] (!%p264_p6)  ;;  %s3056_s14 = smov (!%p264_p6), 8   ;;  %v3291_v61 = vand.u32 (!%p264_p6), 127, %v303_v16 }
   0xe   : > { %2756 = vmatpush3.bf16.msra.mxu0 (!%p264_p6), %v2753_v3  ;;  %v308_v21 = vand.u32 (!%p264_p6), 15, %v3166_v17  ;;  %vm507_vm2 = vcmp.lt.s32.totalorder (!%p264_p6), %v3166_v17, 1  ;;  %vm514_vm3 = vcmp.lt.s32.totalorder (!%p264_p6), %v3166_v17, 7  ;;  %v2772_v28 = vpack.c.bf16 (!%p264_p6), %v628_v19, %v627_v18  ;;  %v3208_v35 = vld [vmem:[%s4016_s4] sm:$0xff] (!%p264_p6)  ;;  %v632_v39 = vld [vmem:[%s4015_s3 + $0x28] sm:$0xff] (!%p264_p6)  ;;  %v633_v43 = vld [vmem:[%s4015_s3 + $0x30] sm:$0xff] (!%p264_p6) }
   0xf   : > { %2758 = vmatprep.subr.bf16.mxu0 (!%p264_p6), %v2757_v5  ;;  %v2776_v37 = vpack.c.bf16 (!%p264_p6), %v630_v30, %v629_v29  ;;  %v631_v38 = vld [vmem:[%s4015_s3 + $0x20] sm:$0xff] (!%p264_p6)  ;;  %v305_v41 = vadd.s32 (!%p264_p6), 8, %v3166_v17  ;;  %v634_v44 = vld [vmem:[%s4015_s3 + $0x38] sm:$0xff] (!%p264_p6)  ;;  %v636_v48 = vld [vmem:[%s4015_s3 + $0x48] sm:$0xff] (!%p264_p6)  ;;  %v3294_v62 = vsub.s32 (!%p264_p6), 0, %v3166_v17  ;;  %v3297_v63 = vsub.s32 (!%p264_p6), 1, %v3166_v17 }
  0x10   : > { %vm3214_vm5 = vcmp.lt.s32.totalorder (!%p264_p6), %v308_v21, 1  ;;  %v2780_v42 = vpack.c.bf16 (!%p264_p6), %v632_v39, %v631_v38  ;;  %v2784_v46 = vpack.c.bf16 (!%p264_p6), %v634_v44, %v633_v43  ;;  %v635_v47 = vld [vmem:[%s4015_s3 + $0x40] sm:$0xff] (!%p264_p6)  ;;  %v637_v51 = vld [vmem:[%s4015_s3 + $0x50] sm:$0xff] (!%p264_p6)  ;;  %v638_v52 = vld [vmem:[%s4015_s3 + $0x58] sm:$0xff] (!%p264_p6)  ;;  %vm314_vm7 = vcmp.lt.s32.totalorder (!%p264_p6), %v3291_v61, 8  ;;  %s293_s16 = sand.u32 (!%p264_p6), 1, %s3042_s27  }
  0x11   : > { %v309_v45 = vand.u32 (!%p264_p6), 15, %v305_v41  ;;  %v2788_v50 = vpack.c.bf16 (!%p264_p6), %v636_v48, %v635_v47  ;;  %v2792_v54 = vpack.c.bf16 (!%p264_p6), %v638_v52, %v637_v51  ;;  %v639_v55 = vld [vmem:[%s4015_s3 + $0x60] sm:$0xff] (!%p264_p6)  ;;  %v640_v56 = vld [vmem:[%s4015_s3 + $0x68] sm:$0xff] (!%p264_p6)  ;;  %v641_v58 = vld [vmem:[%s4015_s3 + $0x70] sm:$0xff] (!%p264_p6)  ;;  %v3306_v3 = vsub.s32 (!%p264_p6), 2, %v3166_v17  ;;  %s2190_s17 = sshll.u32 (!%p264_p6), %s293_s16, 6 }
  0x12   : > { %s4030_s20 = smov (!%p297_p7, %s2191_s20), 3  ;;  %2760 = vmatpush3.bf16.msra.mxu0 %v2757_v5  ;;  %v2796_v57 = vpack.c.bf16 %v640_v56, %v639_v55  ;;  %v642_v59 = vld [vmem:[%s4015_s3 + $0x78] sm:$0xff]  ;;  %v503_v0 = vld [vmem:[%s4014_s2] sm:$0xff]  ;;  %vm315_vm8 = vcmp.ge.s32.totalorder %v3291_v61, 120  ;;  %v3326_v21 = vsub.s32 5, %v3166_v17  ;;  %v3337_v39 = vsub.s32 6, %v3166_v17 }
  0x13   : > { %s2192_s29 = sshll.u32 %s4030_s20, 3  ;;  %2762 = vmatprep.subr.bf16.mxu0 %v2761_v8  ;;  %vm3255_vm6 = vcmp.ge.s32.totalorder %v309_v45, 15  ;;  %v2800_v60 = vpack.c.bf16 %v642_v59, %v641_v58  ;;  %v534_v1 = vrot.slane %v503_v0, %v3294_v62  ;;  %v542_v2 = vrot.slane %v503_v0, %v3297_v63  ;;  %v2285_v49 = vld [vmem:[%s4015_s3 + $0x150] sm:$0xff]  ;;  %v1623_v61 = vld [vmem:[%s4017_s5] sm:$0xff]  ;;  %s2316_s27 = sshll.u32 (%p3127_p4), %s3115_s30, 4 }
  0x14   : > { %s300_s18 = scalar_lea.vmem %s4012_s0, %s2192_s29  ;;  %v550_v10 = vrot.slane %v503_v0, %v3306_v3  ;;  %v586_v38 = vrot.slane %v503_v0, %v3326_v21  ;;  %v3340_v44 = vsub.s32 7, %v3166_v17  ;;  %v606_v55 = vrot.slane %v503_v0, %v3337_v39  ;;  %s2074_s20 = scalar_lea.vmem (%p3127_p4), %s4020_s8, %s2316_s27 }
  0x15   : > { %v316_v11 = vld [vmem:[%s300_s18] sm:$0xff]  ;;  %v317_v13 = vld [vmem:[%s300_s18 + $0x8] sm:$0xff]  ;;  %vm1732_vm9 = vcmask 261120   ;;  %vm1880_vm10 = vcmask 64512  }
  0x16   : > { %2477 = vmatprep.mubr.msk.f32.mxu0 %vm326_vm0, %v316_v11  ;;  %2764 = vmatpush3.bf16.msra.mxu0 %v2761_v8  ;;  %v3312_v8 = vsub.s32 3, %v3166_v17 }
  0x17   : > { %2766 = vmatprep.subr.bf16.mxu0 %v2765_v12 }
  0x1a   : > { %2768 = vmatpush3.bf16.msra.mxu0 %v2765_v12 }
  0x1b   : > { %2807 = vmatprep.subr.bf16.mxu0 %v3052_v14 }
  0x1d   : > { %2478 = vmatmul.mubr.msk.f32.vlgmr.msra.gmra.mrb[0].mxu0 %vm326_vm0, %v317_v13  ;;  %v3317_v13 = vsub.s32 4, %v3166_v17  ;;  %v2280_v17 = vld [vmem:[%s4015_s3 + $0x128] sm:$0xff] }
  0x1e   : > { %2561 = vmatprep.mubr.msk.f32.mxu0 %vm3053_vm1, %v3054_v15 }
  0xf0   : > { %v3174_v20 = vpop.f32.mrb[0].mxu0 }
  0xf1   : > { %v3177_v22 = vpop.f32.mrb[1].mxu0  ;;  %v506_v23 = vrot.slane %v3174_v20, 7  ;;  %v513_v24 = vrot.slane %v3174_v20, 1 }
  0xf2   : > { %v2770_v25 = vpack.c.bf16 %v3174_v20, %v3177_v22  ;;  %v505_v26 = vrot.slane %v3177_v22, 7  ;;  %v512_v27 = vrot.slane %v3177_v22, 1 }
  0xf4   : > { %2771 = vmatpush3.bf16.msra.mxu1 %v2770_v25  ;;  %v3195_v31 = vsel %vm507_vm2, %v505_v26, %v506_v23  ;;  %v509_v32 = vsel %vm507_vm2, %v506_v23, %v505_v26  ;;  %v516_v33 = vsel %vm514_vm3, %v513_v24, %v512_v27  ;;  %v3203_v34 = vsel %vm514_vm3, %v512_v27, %v513_v24 }
  0xf5   : > { %527 = vrot.lane.b32.xlu1 %v3195_v31, %s3055_s11  ;;  %521 = vrot.lane.b32.xlu0 %v3195_v31, %s3056_s14  ;;  %v3228_v40 = vsel %vm3214_vm5, 0.0, %v509_v32  ;;  %v3267_v53 = vsel %vm3255_vm6, 0.0, %v516_v33  ;;  %v544_v9 = vmul.f32 %v542_v2, %v3195_v31  ;;  %v570_v26 = vrot.slane %v503_v0, %v3312_v8 }
  0xf6   : > { %2773 = vmatprep.subr.bf16.mxu1 %v2772_v28  ;;  %v543_v23 = vmul.f32 %v542_v2, %v3228_v40  ;;  %v578_v32 = vrot.slane %v503_v0, %v3317_v13 }
  0xf7   : > { %2485 = vmatmul.mubr.msk.f32.vlgmr.msra.gmra.mrb[0].mxu1 %vm412_vm4, %v3208_v35 }
  0xf8   : > { %2775 = vmatpush3.bf16.msra.mxu1 %v2772_v28  ;;  %v580_v47 = vmul.f32 %v3174_v20, %v578_v32 }
  0xf9   : > { %525 = vrot.lane.b32.xlu1 %v3228_v40, %s3055_s11  ;;  %519 = vrot.lane.b32.xlu0 %v3228_v40, %s3056_s14 }
  0xfa   : > { %2777 = vmatprep.subr.bf16.mxu1 %v2776_v37 }
  0xfc   : > { %2779 = vmatpush3.bf16.msra.mxu1 %v2776_v37 }
  0xfd   : > { %557 = vrot.lane.b32.xlu1 %v3174_v20, %s3056_s14  ;;  %555 = vrot.lane.b32.xlu0 %v3177_v22, %s3056_s14 }
  0xfe   : > { %2781 = vmatprep.subr.bf16.mxu1 %v2780_v42 }
 0x100   : > { %2783 = vmatpush3.bf16.msra.mxu1 %v2780_v42 }
 0x101   : > { %563 = vrot.lane.b32.xlu1 %v3174_v20, %s3055_s11  ;;  %561 = vrot.lane.b32.xlu0 %v3177_v22, %s3055_s11 }
 0x102   : > { %2785 = vmatprep.subr.bf16.mxu1 %v2784_v46 }
 0x104   : > { %2787 = vmatpush3.bf16.msra.mxu1 %v2784_v46 }
 0x105   : > { %593 = vrot.lane.b32.xlu1 %v3267_v53, %s3056_s14  ;;  %591 = vrot.lane.b32.xlu0 %v3203_v34, %s3056_s14 }
 0x106   : > { %2789 = vmatprep.subr.bf16.mxu1 %v2788_v50 }
 0x108   : > { %2791 = vmatpush3.bf16.msra.mxu1 %v2788_v50  ;;  %v579_v50 = vmul.f32 %v578_v32, %v3177_v22  ;;  %v2237_v32 = vld [vmem:[%s4015_s3 + $0x80] sm:$0xff] }
 0x109   : > { %599 = vrot.lane.b32.xlu1 %v3267_v53, %s3055_s11  ;;  %597 = vrot.lane.b32.xlu0 %v3203_v34, %s3055_s11 }
 0x10a   : > { %2793 = vmatprep.subr.bf16.mxu1 %v2792_v54 }
 0x10c   : > { %2795 = vmatpush3.bf16.msra.mxu1 %v2792_v54 }
 0x10d   : > { %2797 = vmatprep.subr.bf16.mxu1 %v2796_v57 }
 0x110   : > { %2799 = vmatpush3.bf16.msra.mxu1 %v2796_v57 }
 0x111   : > { %2801 = vmatprep.subr.bf16.mxu1 %v2800_v60 }
 0x114   : > { %2803 = vmatpush3.bf16.msra.mxu1 %v2800_v60  ;;  %v614_v60 = vrot.slane %v503_v0, %v3340_v44 }
 0x115   : > { %2804 = vmatprep.subr.bf16.mxu1 %v3052_v14 }
 0x116   : > { %v615_v0 = vmul.f32 %v614_v60, %v3203_v34 }
 0x167   : > { %v528_v4 = vpop.permute.xlu1 %527  ;;  %v522_v5 = vpop.permute.xlu0 %521 }
 0x168   : > { %v524_v6 = vsel %vm314_vm7, 0.0, %v522_v5  ;;  %v530_v16 = vsel %vm315_vm8, 0.0, %v528_v4 }
 0x169   : > { %v536_v7 = vmul.f32 %v534_v1, %v524_v6  ;;  %v552_v27 = vmul.f32 %v550_v10, %v530_v16 }
 0x16b   : > { %v526_v11 = vpop.permute.xlu1 %525  ;;  %v520_v12 = vpop.permute.xlu0 %519  ;;  %v546_v24 = vadd.f32 %v544_v9, %v536_v7 }
 0x16c   : > { %v529_v18 = vsel %vm315_vm8, 0.0, %v526_v11  ;;  %v523_v19 = vsel %vm314_vm7, 0.0, %v520_v12  ;;  %v2214_v11 = vld [vmem:[%s4014_s2 + $0x8] ss:$0 sm:$0xff]  ;;  %v616_v12 = vmul.f32 %v614_v60, %v3267_v53  ;;  %v2243_v60 = vld [vmem:[%s4015_s3 + $0xb0] sm:$0xff] }
 0x16d   : > { %v535_v25 = vmul.f32 %v534_v1, %v523_v19  ;;  %v551_v28 = vmul.f32 %v550_v10, %v529_v18  ;;  %v554_v40 = vadd.f32 %v552_v27, %v546_v24 }
 0x16f   : > { %v545_v29 = vadd.f32 %v543_v23, %v535_v25  ;;  %v558_v30 = vpop.permute.xlu1 %557  ;;  %v556_v31 = vpop.permute.xlu0 %555 }
 0x170   : > { %v560_v33 = vsel %vm314_vm7, 0.0, %v558_v30  ;;  %v559_v37 = vsel %vm314_vm7, 0.0, %v556_v31 }
 0x171   : > { %v572_v41 = vmul.f32 %v570_v26, %v560_v33  ;;  %v553_v42 = vadd.f32 %v551_v28, %v545_v29  ;;  %v571_v43 = vmul.f32 %v570_v26, %v559_v37  ;;  %v2238_v33 = vld [vmem:[%s4015_s3 + $0x88] sm:$0xff] }
 0x173   : > { %v574_v45 = vadd.f32 %v572_v41, %v554_v40  ;;  %v573_v46 = vadd.f32 %v571_v43, %v553_v42  ;;  %v564_v48 = vpop.permute.xlu1 %563  ;;  %v562_v51 = vpop.permute.xlu0 %561  ;;  %v2855_v42 = vpack.c.bf16 %v2238_v33, %v2237_v32  ;;  %v2252_v32 = vld [vmem:[%s4015_s3 + $0xf8] sm:$0xff] }
 0x174   : > { %v566_v52 = vsel %vm315_vm8, 0.0, %v564_v48  ;;  %v565_v54 = vsel %vm315_vm8, 0.0, %v562_v51  ;;  %v2240_v48 = vld [vmem:[%s4015_s3 + $0x98] sm:$0xff] }
 0x175   : > { %v582_v56 = vadd.f32 %v580_v47, %v574_v45  ;;  %v588_v57 = vmul.f32 %v586_v38, %v566_v52  ;;  %v581_v58 = vadd.f32 %v579_v50, %v573_v46  ;;  %v587_v59 = vmul.f32 %v586_v38, %v565_v54  ;;  %v2239_v47 = vld [vmem:[%s4015_s3 + $0x90] sm:$0xff] }
 0x177   : > { %v594_v1 = vpop.permute.xlu1 %593  ;;  %v592_v2 = vpop.permute.xlu0 %591  ;;  %v590_v6 = vadd.f32 %v588_v57, %v582_v56  ;;  %v589_v7 = vadd.f32 %v587_v59, %v581_v58  ;;  %v2859_v56 = vpack.c.bf16 %v2240_v48, %v2239_v47  ;;  %v2241_v57 = vld [vmem:[%s4015_s3 + $0xa0] sm:$0xff]  ;;  %v2242_v58 = vld [vmem:[%s4015_s3 + $0xa8] sm:$0xff] }
 0x178   : > { %v596_v4 = vsel %vm314_vm7, 0.0, %v594_v1  ;;  %v595_v5 = vsel %vm314_vm7, 0.0, %v592_v2  ;;  %v2863_v59 = vpack.c.bf16 %v2242_v58, %v2241_v57  ;;  %v2244_v1 = vld [vmem:[%s4015_s3 + $0xb8] sm:$0xff]  ;;  %v2230_v48 = vld [vmem:[%s4017_s5 + $0x160] sm:$0xff] }
 0x179   : > { %v608_v9 = vmul.f32 %v606_v55, %v596_v4  ;;  %v607_v10 = vmul.f32 %v606_v55, %v595_v5  ;;  %v2867_v2 = vpack.c.bf16 %v2244_v1, %v2243_v60  ;;  %v2245_v4 = vld [vmem:[%s4015_s3 + $0xc0] sm:$0xff]  ;;  %v2246_v5 = vld [vmem:[%s4015_s3 + $0xc8] sm:$0xff]  ;;  %v2233_v57 = vld [vmem:[%s4017_s5 + $0x178] sm:$0xff] }
 0x17a   : > { %v2234_v60 = vld [vmem:[%s4014_s2 + $0x10] sm:$0xff] }
 0x17b   : > { %v610_v16 = vadd.f32 %v608_v9, %v590_v6  ;;  %v609_v18 = vadd.f32 %v607_v10, %v589_v7  ;;  %v600_v19 = vpop.permute.xlu1 %599  ;;  %v598_v23 = vpop.permute.xlu0 %597  ;;  %v2218_v6 = vld [vmem:[%s4017_s5 + $0x100] sm:$0xff]  ;;  %v2219_v7 = vld [vmem:[%s4017_s5 + $0x108] sm:$0xff]  ;;  %v2220_v9 = vld [vmem:[%s4017_s5 + $0x110] sm:$0xff] }
 0x17c   : > { %v602_v24 = vsel %vm315_vm8, 0.0, %v600_v19  ;;  %v601_v25 = vsel %vm315_vm8, 0.0, %v598_v23  ;;  %v2222_v23 = vld [vmem:[%s4017_s5 + $0x120] sm:$0xff] }
 0x17d   : > { %v618_v26 = vadd.f32 %v616_v12, %v610_v16  ;;  %v624_v27 = vmul.f32 %v2214_v11, %v602_v24  ;;  %v617_v28 = vadd.f32 %v615_v0, %v609_v18  ;;  %v623_v29 = vmul.f32 %v2214_v11, %v601_v25  ;;  %v2221_v12 = vld [vmem:[%s4017_s5 + $0x118] sm:$0xff]  ;;  %v2247_v16 = vld [vmem:[%s4015_s3 + $0xd0] sm:$0xff]  ;;  %v2223_v24 = vld [vmem:[%s4017_s5 + $0x128] sm:$0xff] }
 0x17e   : > { %v2808_v11 = vpack.c.bf16 %v2219_v7, %v2218_v6  ;;  %v2871_v0 = vpack.c.bf16 %v2246_v5, %v2245_v4  ;;  %v2248_v18 = vld [vmem:[%s4015_s3 + $0xd8] sm:$0xff]  ;;  %v2811_v19 = vpack.c.bf16 %v2221_v12, %v2220_v9  ;;  %v990_v4 = vrot.slane %v2234_v60, %v3297_v63 }
 0x17f   : > { %v626_v30 = vadd.f32 %v624_v27, %v618_v26  ;;  %v625_v31 = vadd.f32 %v623_v29, %v617_v28  ;;  %v2875_v25 = vpack.c.bf16 %v2248_v18, %v2247_v16  ;;  %v2249_v26 = vld [vmem:[%s4015_s3 + $0xe0] sm:$0xff]  ;;  %v2250_v27 = vld [vmem:[%s4015_s3 + $0xe8] sm:$0xff]  ;;  %v2814_v28 = vpack.c.bf16 %v2223_v24, %v2222_v23  ;;  %v2224_v29 = vld [vmem:[%s4017_s5 + $0x130] sm:$0xff] }
 0x180   : > { %2809 = vmatpush3.bf16.msra.mxu0 %v2808_v11  ;;  %v998_v12 = vrot.slane %v2234_v60, %v3306_v3  ;;  %v1018_v18 = vrot.slane %v2234_v60, %v3312_v8 }
 0x181   : > { %2519 = vmatprep.mubr.f32.mxu1 %v625_v31  ;;  %2810 = vmatprep.subr.bf16.mxu0 %v3052_v14  ;;  %v2879_v31 = vpack.c.bf16 %v2250_v27, %v2249_v26  ;;  %v1026_v27 = vrot.slane %v2234_v60, %v3317_v13 }
 0x182   : > { %2520 = vmatmul.mubr.f32.vlgmr.msra.gmra.mrb[2].mxu1 %v626_v30  ;;  %v2225_v30 = vld [vmem:[%s4017_s5 + $0x138] sm:$0xff] }
 0x183   : > { %2526 = vmatprep.mubr.msk.f32.mxu1 %vm3053_vm1, %v3054_v15  ;;  %v2817_v33 = vpack.c.bf16 %v2225_v30, %v2224_v29 }
 0x184   : > { %2812 = vmatpush3.bf16.msra.mxu0 %v2811_v19 }
 0x185   : > { %2813 = vmatprep.subr.bf16.mxu0 %v3052_v14 }
 0x188   : > { %2815 = vmatpush3.bf16.msra.mxu0 %v2814_v28 }
 0x189   : > { %2816 = vmatprep.subr.bf16.mxu0 %v3052_v14 }
 0x18c   : > { %2818 = vmatpush3.bf16.msra.mxu0 %v2817_v33  ;;  %v1034_v33 = vrot.slane %v2234_v60, %v3326_v21 }
 0x18d   : > { %2819 = vmatprep.subr.bf16.mxu0 %v3052_v14 }
 0x1ca   : > { %v3365_v34 = vpop.f32.mrb[0].mxu1 }
 0x1cb   : > { %v2486_v53 = vpop.f32.mrb[1].mxu1 }
 0x1cc   : > { %v2251_v53 = vld [vmem:[%s4015_s3 + $0xf0] sm:$0xff] }
 0x255   : > { %v3373_v37 = vpop.f32.mrb[2].mxu1 }
 0x256   : > { %1005 = vrot.lane.b32.xlu1 %v3373_v37, %s3056_s14  ;;  %v3377_v38 = vpop.f32.mrb[3].mxu1  ;;  %v956_v40 = vrot.slane %v3373_v37, 7  ;;  %v962_v41 = vrot.slane %v3373_v37, 1 }
 0x257   : > { %1003 = vrot.lane.b32.xlu0 %v3377_v38, %s3056_s14  ;;  %v2805_v43 = vpack.c.bf16 %v3373_v37, %v3377_v38  ;;  %v955_v45 = vrot.slane %v3377_v38, 7  ;;  %v961_v46 = vrot.slane %v3377_v38, 1 }
 0x259   : > { %2806 = vmatpush3.bf16.msra.mxu1 %v2805_v43  ;;  %v3395_v50 = vsel %vm507_vm2, %v955_v45, %v956_v40  ;;  %v958_v51 = vsel %vm507_vm2, %v956_v40, %v955_v45  ;;  %v964_v52 = vsel %vm514_vm3, %v962_v41, %v961_v46  ;;  %v3403_v54 = vsel %vm514_vm3, %v961_v46, %v962_v41  ;;  %v2226_v40 = vld [vmem:[%s4017_s5 + $0x140] sm:$0xff]  ;;  %v2227_v41 = vld [vmem:[%s4017_s5 + $0x148] sm:$0xff]  ;;  %v2228_v45 = vld [vmem:[%s4017_s5 + $0x150] sm:$0xff] }
 0x25a   : > { %969 = vrot.lane.b32.xlu1 %v3395_v50, %s3056_s14  ;;  %v3409_v55 = vsel %vm3214_vm5, 0.0, %v958_v51  ;;  %2856 = vmatprep.subr.bf16.mxu1 %v2855_v42  ;;  %v3452_v10 = vsel %vm3255_vm6, 0.0, %v964_v52  ;;  %v2820_v43 = vpack.c.bf16 %v2227_v41, %v2226_v40  ;;  %v2229_v46 = vld [vmem:[%s4017_s5 + $0x158] sm:$0xff]  ;;  %v2231_v51 = vld [vmem:[%s4017_s5 + $0x168] sm:$0xff]  ;;  %v992_v16 = vmul.f32 %v990_v4, %v3395_v50 }
 0x25b   : > { %967 = vrot.lane.b32.xlu0 %v3409_v55, %s3056_s14  ;;  %v2823_v47 = vpack.c.bf16 %v2229_v46, %v2228_v45  ;;  %v2826_v52 = vpack.c.bf16 %v2231_v51, %v2230_v48  ;;  %v991_v23 = vmul.f32 %v990_v4, %v3409_v55  ;;  %v1054_v51 = vrot.slane %v2234_v60, %v3337_v39 }
 0x25c   : > { %2527 = vmatmul.mubr.msk.f32.vlgmr.msra.gmra.mrb[4].mxu1 %vm412_vm4, %v3208_v35  ;;  %2821 = vmatpush3.bf16.msra.mxu0 %v2820_v43 }
 0x25d   : > { %2858 = vmatpush3.bf16.msra.mxu1 %v2855_v42  ;;  %v2883_v42 = vpack.c.bf16 %v2252_v32, %v2251_v53  ;;  %2822 = vmatprep.subr.bf16.mxu0 %v3052_v14 }
 0x25e   : > { %975 = vrot.lane.b32.xlu1 %v3395_v50, %s3055_s11  ;;  %2860 = vmatprep.subr.bf16.mxu1 %v2859_v56 }
 0x25f   : > { %973 = vrot.lane.b32.xlu0 %v3409_v55, %s3055_s11 }
 0x260   : > { %2824 = vmatpush3.bf16.msra.mxu0 %v2823_v47  ;;  %v1028_v47 = vmul.f32 %v3373_v37, %v1026_v27 }
 0x261   : > { %2862 = vmatpush3.bf16.msra.mxu1 %v2859_v56  ;;  %2825 = vmatprep.subr.bf16.mxu0 %v3052_v14  ;;  %v2232_v56 = vld [vmem:[%s4017_s5 + $0x170] sm:$0xff] }
 0x262   : > { %1011 = vrot.lane.b32.xlu1 %v3373_v37, %s3055_s11  ;;  %2864 = vmatprep.subr.bf16.mxu1 %v2863_v59  ;;  %v2829_v58 = vpack.c.bf16 %v2233_v57, %v2232_v56  ;;  %v1027_v56 = vmul.f32 %v1026_v27, %v3377_v38  ;;  %v1062_v57 = vrot.slane %v2234_v60, %v3340_v44 }
 0x263   : > { %1009 = vrot.lane.b32.xlu0 %v3377_v38, %s3055_s11 }
 0x264   : > { %2827 = vmatpush3.bf16.msra.mxu0 %v2826_v52 }
 0x265   : > { %2866 = vmatpush3.bf16.msra.mxu1 %v2863_v59  ;;  %2828 = vmatprep.subr.bf16.mxu0 %v3052_v14 }
 0x266   : > { %1041 = vrot.lane.b32.xlu1 %v3452_v10, %s3056_s14  ;;  %2868 = vmatprep.subr.bf16.mxu1 %v2867_v2 }
 0x267   : > { %1039 = vrot.lane.b32.xlu0 %v3403_v54, %s3056_s14 }
 0x268   : > { %2830 = vmatpush3.bf16.msra.mxu0 %v2829_v58 }
 0x269   : > { %2870 = vmatpush3.bf16.msra.mxu1 %v2867_v2  ;;  %2831 = vmatprep.subr.bf16.mxu0 %v3052_v14  ;;  %v982_v2 = vrot.slane %v2234_v60, %v3294_v62  ;;  %v2236_v60 = vld [vmem:[%s4014_s2 + $0x18] ss:$0 sm:$0xff] }
 0x26a   : > { %1047 = vrot.lane.b32.xlu1 %v3452_v10, %s3055_s11  ;;  %2872 = vmatprep.subr.bf16.mxu1 %v2871_v0 }
 0x26b   : > { %1045 = vrot.lane.b32.xlu0 %v3403_v54, %s3055_s11 }
 0x26d   : > { %2874 = vmatpush3.bf16.msra.mxu1 %v2871_v0 }
 0x26e   : > { %2876 = vmatprep.subr.bf16.mxu1 %v2875_v25 }
 0x271   : > { %2878 = vmatpush3.bf16.msra.mxu1 %v2875_v25 }
 0x272   : > { %2880 = vmatprep.subr.bf16.mxu1 %v2879_v31 }
 0x275   : > { %2882 = vmatpush3.bf16.msra.mxu1 %v2879_v31 }
 0x276   : > { %2884 = vmatprep.subr.bf16.mxu1 %v2883_v42 }
 0x279   : > { %2886 = vmatpush3.bf16.msra.mxu1 %v2883_v42 }
 0x27a   : > { %2887 = vmatprep.subr.bf16.mxu1 %v3052_v14 }
 0x2c8   : > { %v1006_v59 = vpop.permute.xlu1 %1005 }
 0x2c9   : > { %v1004_v1 = vpop.permute.xlu0 %1003  ;;  %v1008_v24 = vsel %vm314_vm7, 0.0, %v1006_v59 }
 0x2ca   : > { %v1007_v28 = vsel %vm314_vm7, 0.0, %v1004_v1  ;;  %v1020_v55 = vmul.f32 %v1018_v18, %v1008_v24 }
 0x2cb   : > { %v1019_v41 = vmul.f32 %v1018_v18, %v1007_v28 }
 0x2cc   : > { %v970_v5 = vpop.permute.xlu1 %969 }
 0x2cd   : > { %v972_v6 = vsel %vm314_vm7, 0.0, %v970_v5  ;;  %v968_v7 = vpop.permute.xlu0 %967 }
 0x2ce   : > { %v984_v9 = vmul.f32 %v982_v2, %v972_v6  ;;  %v971_v11 = vsel %vm314_vm7, 0.0, %v968_v7 }
 0x2cf   : > { %v983_v0 = vmul.f32 %v982_v2, %v971_v11 }
 0x2d0   : > { %v976_v19 = vpop.permute.xlu1 %975  ;;  %v994_v29 = vadd.f32 %v992_v16, %v984_v9  ;;  %v1064_v16 = vmul.f32 %v1062_v57, %v3452_v10  ;;  %v2199_v10 = vld [vmem:[%s4017_s5 + $0x188] sm:$0xff] }
 0x2d1   : > { %v978_v25 = vsel %vm315_vm8, 0.0, %v976_v19  ;;  %v974_v26 = vpop.permute.xlu0 %973  ;;  %v993_v31 = vadd.f32 %v991_v23, %v983_v0  ;;  %v1063_v23 = vmul.f32 %v1062_v57, %v3403_v54  ;;  %v2198_v54 = vld [vmem:[%s4017_s5 + $0x180] sm:$0xff] }
 0x2d2   : > { %v1000_v30 = vmul.f32 %v998_v12, %v978_v25  ;;  %v977_v50 = vsel %vm315_vm8, 0.0, %v974_v26 }
 0x2d3   : > { %v999_v53 = vmul.f32 %v998_v12, %v977_v50 }
 0x2d4   : > { %v1002_v32 = vadd.f32 %v1000_v30, %v994_v29  ;;  %v1012_v40 = vpop.permute.xlu1 %1011 }
 0x2d5   : > { %v1001_v42 = vadd.f32 %v999_v53, %v993_v31  ;;  %v1014_v43 = vsel %vm315_vm8, 0.0, %v1012_v40  ;;  %v1010_v45 = vpop.permute.xlu0 %1009 }
 0x2d6   : > { %v1022_v46 = vadd.f32 %v1020_v55, %v1002_v32  ;;  %v1013_v48 = vsel %vm315_vm8, 0.0, %v1010_v45  ;;  %v1036_v59 = vmul.f32 %v1034_v33, %v1014_v43  ;;  %v2832_v55 = vpack.c.bf16 %v2199_v10, %v2198_v54  ;;  %v2200_v32 = vld [vmem:[%s4017_s5 + $0x190] sm:$0xff]  ;;  %v2202_v43 = vld [vmem:[%s4017_s5 + $0x1a0] sm:$0xff]  ;;  %v2203_v45 = vld [vmem:[%s4017_s5 + $0x1a8] sm:$0xff] }
 0x2d7   : > { %v1021_v52 = vadd.f32 %v1019_v41, %v1001_v42  ;;  %v1035_v4 = vmul.f32 %v1034_v33, %v1013_v48  ;;  %v2201_v33 = vld [vmem:[%s4017_s5 + $0x198] sm:$0xff]  ;;  %v2281_v54 = vld [vmem:[%s4015_s3 + $0x130] sm:$0xff] }
 0x2d8   : > { %v1030_v58 = vadd.f32 %v1028_v47, %v1022_v46  ;;  %v1042_v1 = vpop.permute.xlu1 %1041  ;;  %v2835_v42 = vpack.c.bf16 %v2201_v33, %v2200_v32  ;;  %v2838_v46 = vpack.c.bf16 %v2203_v45, %v2202_v43  ;;  %v2204_v47 = vld [vmem:[%s4017_s5 + $0x1b0] sm:$0xff]  ;;  %v2205_v48 = vld [vmem:[%s4017_s5 + $0x1b8] sm:$0xff]  ;;  %v2284_v32 = vld [vmem:[%s4015_s3 + $0x148] sm:$0xff] }
 0x2d9   : > { %v1029_v2 = vadd.f32 %v1027_v56, %v1021_v52  ;;  %v1044_v5 = vsel %vm314_vm7, 0.0, %v1042_v1  ;;  %v1040_v6 = vpop.permute.xlu0 %1039  ;;  %v2206_v52 = vld [vmem:[%s4017_s5 + $0x1c0] sm:$0xff]  ;;  %v2207_v56 = vld [vmem:[%s4017_s5 + $0x1c8] sm:$0xff]  ;;  %v2282_v10 = vld [vmem:[%s4015_s3 + $0x138] sm:$0xff] }
 0x2da   : > { %v1038_v7 = vadd.f32 %v1036_v59, %v1030_v58  ;;  %v1056_v9 = vmul.f32 %v1054_v51, %v1044_v5  ;;  %v1043_v11 = vsel %vm314_vm7, 0.0, %v1040_v6  ;;  %v2844_v57 = vpack.c.bf16 %v2207_v56, %v2206_v52  ;;  %v2208_v58 = vld [vmem:[%s4017_s5 + $0x1d0] sm:$0xff]  ;;  %v2209_v59 = vld [vmem:[%s4017_s5 + $0x1d8] sm:$0xff]  ;;  %v2256_v33 = vld [vmem:[%s4017_s5 + $0x80] sm:$0xff] }
 0x2db   : > { %v1037_v12 = vadd.f32 %v1035_v4, %v1029_v2  ;;  %v1055_v0 = vmul.f32 %v1054_v51, %v1043_v11  ;;  %v2841_v51 = vpack.c.bf16 %v2205_v48, %v2204_v47  ;;  %v2847_v1 = vpack.c.bf16 %v2209_v59, %v2208_v58  ;;  %v2210_v2 = vld [vmem:[%s4017_s5 + $0x1e0] sm:$0xff]  ;;  %v2211_v4 = vld [vmem:[%s4017_s5 + $0x1e8] sm:$0xff]  ;;  %v2212_v6 = vld [vmem:[%s4017_s5 + $0x1f0] sm:$0xff] }
 0x2dc   : > { %v1058_v18 = vadd.f32 %v1056_v9, %v1038_v7  ;;  %v1048_v19 = vpop.permute.xlu1 %1047  ;;  %v2850_v5 = vpack.c.bf16 %v2211_v4, %v2210_v2  ;;  %v2213_v7 = vld [vmem:[%s4017_s5 + $0x1f8] sm:$0xff]  ;;  %v2275_v11 = vld [vmem:[%s4015_s3 + $0x100] sm:$0xff]  ;;  %v2261_v52 = vld [vmem:[%s4017_s5 + $0xa8] sm:$0xff] }
 0x2dd   : > { %v1057_v24 = vadd.f32 %v1055_v0, %v1037_v12  ;;  %v1050_v25 = vsel %vm315_vm8, 0.0, %v1048_v19  ;;  %v1046_v26 = vpop.permute.xlu0 %1045  ;;  %v2853_v9 = vpack.c.bf16 %v2213_v7, %v2212_v6  ;;  %v2276_v12 = vld [vmem:[%s4015_s3 + $0x108] sm:$0xff]  ;;  %v2259_v45 = vld [vmem:[%s4017_s5 + $0x98] sm:$0xff] }
 0x2de   : > { %v1066_v27 = vadd.f32 %v1064_v16, %v1058_v18  ;;  %v1072_v28 = vmul.f32 %v2236_v60, %v1050_v25  ;;  %v1049_v29 = vsel %vm315_vm8, 0.0, %v1046_v26  ;;  %v2914_v18 = vpack.c.bf16 %v2276_v12, %v2275_v11  ;;  %v2277_v25 = vld [vmem:[%s4015_s3 + $0x110] sm:$0xff]  ;;  %v2278_v26 = vld [vmem:[%s4015_s3 + $0x118] sm:$0xff]  ;;  %v2288_v58 = vld [vmem:[%s4015_s3 + $0x168] sm:$0xff] }
 0x2df   : > { %v1065_v30 = vadd.f32 %v1063_v23, %v1057_v24  ;;  %v1071_v50 = vmul.f32 %v2236_v60, %v1049_v29  ;;  %v2286_v47 = vld [vmem:[%s4015_s3 + $0x158] sm:$0xff]  ;;  %v2265_v11 = vld [vmem:[%s4017_s5 + $0xc8] sm:$0xff] }
 0x2e0   : > { %v1074_v53 = vadd.f32 %v1072_v28, %v1066_v27  ;;  %v2934_v56 = vpack.c.bf16 %v2286_v47, %v2285_v49  ;;  %v2263_v2 = vld [vmem:[%s4017_s5 + $0xb8] sm:$0xff] }
 0x2e1   : > { %v1073_v31 = vadd.f32 %v1071_v50, %v1065_v30  ;;  %v2290_v6 = vld [vmem:[%s4015_s3 + $0x178] sm:$0xff] }
 0x2e3   : > { %2631 = vmatprep.mubr.f32.mxu1 %v1073_v31  ;;  %v2918_v31 = vpack.c.bf16 %v2278_v26, %v2277_v25  ;;  %v2270_v26 = vld [vmem:[%s4017_s5 + $0xf0] sm:$0xff] }
 0x2e4   : > { %2632 = vmatmul.mubr.f32.vlgmr.msra.gmra.mrb[6].mxu1 %v1074_v53  ;;  %v2279_v53 = vld [vmem:[%s4015_s3 + $0x120] sm:$0xff] }
 0x2e5   : > { %2638 = vmatprep.mubr.msk.f32.mxu1 %vm3053_vm1, %v3054_v15  ;;  %v2922_v36 = vpack.c.bf16 %v2280_v17, %v2279_v53  ;;  %v2272_v53 = vld [vmem:[%s4014_s2 + $0x20] sm:$0xff] }
 0x32f   : > { %v791_v40 = vpop.f32.mrb[4].mxu1 }
 0x330   : > { %2562 = vmatmul.mubr.f32.vlgmr.msra.gmra.mrb[2].mxu0 %v791_v40  ;;  %v2528_v41 = vpop.f32.mrb[5].mxu1  ;;  %v2257_v40 = vld [vmem:[%s4017_s5 + $0x88] sm:$0xff] }
 0x331   : > { %2833 = vmatpush3.bf16.msra.mxu0 %v2832_v55  ;;  %2596 = vmatprep.mubr.msk.f32.mxu0 %vm3053_vm1, %v3054_v15  ;;  %v2283_v55 = vld [vmem:[%s4015_s3 + $0x140] sm:$0xff]  ;;  %v2258_v41 = vld [vmem:[%s4017_s5 + $0x90] sm:$0xff]  ;;  %v2891_v43 = vpack.c.bf16 %v2257_v40, %v2256_v33  ;;  %v1378_v40 = vrot.slane %v2272_v53, %v3306_v3 }
 0x332   : > { %2834 = vmatprep.subr.bf16.mxu0 %v3052_v14  ;;  %v2894_v48 = vpack.c.bf16 %v2259_v45, %v2258_v41  ;;  %v1398_v45 = vrot.slane %v2272_v53, %v3312_v8 }
 0x335   : > { %2836 = vmatpush3.bf16.msra.mxu0 %v2835_v42 }
 0x336   : > { %2837 = vmatprep.subr.bf16.mxu0 %v3052_v14 }
 0x339   : > { %2839 = vmatpush3.bf16.msra.mxu0 %v2838_v46  ;;  %v2930_v46 = vpack.c.bf16 %v2284_v32, %v2283_v55 }
 0x33a   : > { %2840 = vmatprep.subr.bf16.mxu0 %v3052_v14 }
 0x33d   : > { %2842 = vmatpush3.bf16.msra.mxu0 %v2841_v51  ;;  %v2260_v51 = vld [vmem:[%s4017_s5 + $0xa0] sm:$0xff] }
 0x33e   : > { %2843 = vmatprep.subr.bf16.mxu0 %v3052_v14  ;;  %v2897_v59 = vpack.c.bf16 %v2261_v52, %v2260_v51 }
 0x341   : > { %2845 = vmatpush3.bf16.msra.mxu0 %v2844_v57  ;;  %v2287_v57 = vld [vmem:[%s4015_s3 + $0x160] sm:$0xff] }
 0x342   : > { %2846 = vmatprep.subr.bf16.mxu0 %v3052_v14  ;;  %v2938_v4 = vpack.c.bf16 %v2288_v58, %v2287_v57  ;;  %v1414_v58 = vrot.slane %v2272_v53, %v3326_v21  ;;  %v1442_v21 = vrot.slane %v2272_v53, %v3340_v44  ;;  %v2274_v44 = vld [vmem:[%s4014_s2 + $0x28] ss:$0 sm:$0xff] }
 0x345   : > { %2848 = vmatpush3.bf16.msra.mxu0 %v2847_v1  ;;  %v2262_v1 = vld [vmem:[%s4017_s5 + $0xb0] sm:$0xff] }
 0x346   : > { %2849 = vmatprep.subr.bf16.mxu0 %v3052_v14  ;;  %v2900_v7 = vpack.c.bf16 %v2263_v2, %v2262_v1 }
 0x349   : > { %2851 = vmatpush3.bf16.msra.mxu0 %v2850_v5  ;;  %v2289_v5 = vld [vmem:[%s4015_s3 + $0x170] sm:$0xff] }
 0x34a   : > { %2852 = vmatprep.subr.bf16.mxu0 %v3052_v14  ;;  %v2942_v12 = vpack.c.bf16 %v2290_v6, %v2289_v5 }
 0x34d   : > { %2854 = vmatpush3.bf16.msra.mxu0 %v2853_v9  ;;  %v2264_v9 = vld [vmem:[%s4017_s5 + $0xc0] sm:$0xff] }
 0x34e   : > { %2890 = vmatprep.subr.bf16.mxu0 %v3052_v14 }
 0x350   : > { %2597 = vmatmul.mubr.f32.vlgmr.msra.gmra.mrb[2].mxu0 %v3365_v34 }
 0x351   : > { %2673 = vmatprep.mubr.msk.f32.mxu0 %vm3053_vm1, %v3054_v15  ;;  %2892 = vmatpush3.bf16.msra.mxu0 %v2891_v43 }
 0x352   : > { %2893 = vmatprep.subr.bf16.mxu0 %v3052_v14 }
 0x355   : > { %2895 = vmatpush3.bf16.msra.mxu0 %v2894_v48  ;;  %v1406_v48 = vrot.slane %v2272_v53, %v3317_v13 }
 0x356   : > { %2896 = vmatprep.subr.bf16.mxu0 %v3052_v14 }
 0x359   : > { %2898 = vmatpush3.bf16.msra.mxu0 %v2897_v59 }
 0x35a   : > { %2899 = vmatprep.subr.bf16.mxu0 %v3052_v14 }
 0x35d   : > { %2901 = vmatpush3.bf16.msra.mxu0 %v2900_v7 }
 0x35e   : > { %2902 = vmatprep.subr.bf16.mxu0 %v3052_v14 }
 0x3b7   : > { %v3641_v0 = vpop.f32.mrb[6].mxu1 }
 0x3b8   : > { %1385 = vrot.lane.b32.xlu1 %v3641_v0, %s3056_s14  ;;  %v3645_v60 = vpop.f32.mrb[7].mxu1  ;;  %v1336_v34 = vrot.slane %v3641_v0, 7  ;;  %v1342_v16 = vrot.slane %v3641_v0, 1  ;;  %v1408_v6 = vmul.f32 %v3641_v0, %v1406_v48 }
 0x3b9   : > { %1383 = vrot.lane.b32.xlu0 %v3645_v60, %s3056_s14  ;;  %v2888_v19 = vpack.c.bf16 %v3641_v0, %v3645_v60  ;;  %v1335_v23 = vrot.slane %v3645_v60, 7  ;;  %v1341_v24 = vrot.slane %v3645_v60, 1 }
 0x3bb   : > { %2889 = vmatpush3.bf16.msra.mxu1 %v2888_v19  ;;  %v3663_v27 = vsel %vm507_vm2, %v1335_v23, %v1336_v34  ;;  %v1338_v28 = vsel %vm507_vm2, %v1336_v34, %v1335_v23  ;;  %v1344_v29 = vsel %vm514_vm3, %v1342_v16, %v1341_v24  ;;  %v3671_v30 = vsel %vm514_vm3, %v1341_v24, %v1342_v16  ;;  %v2266_v16 = vld [vmem:[%s4017_s5 + $0xd0] sm:$0xff]  ;;  %v2268_v23 = vld [vmem:[%s4017_s5 + $0xe0] sm:$0xff]  ;;  %v2269_v24 = vld [vmem:[%s4017_s5 + $0xe8] sm:$0xff] }
 0x3bc   : > { %1349 = vrot.lane.b32.xlu1 %v3663_v27, %s3056_s14  ;;  %v3677_v50 = vsel %vm3214_vm5, 0.0, %v1338_v28  ;;  %2915 = vmatprep.subr.bf16.mxu1 %v2914_v18  ;;  %v3720_v42 = vsel %vm3255_vm6, 0.0, %v1344_v29  ;;  %v2903_v34 = vpack.c.bf16 %v2265_v11, %v2264_v9  ;;  %v2909_v25 = vpack.c.bf16 %v2269_v24, %v2268_v23  ;;  %v2271_v28 = vld [vmem:[%s4017_s5 + $0xf8] sm:$0xff] }
 0x3bd   : > { %1347 = vrot.lane.b32.xlu0 %v3677_v50, %s3056_s14  ;;  %v2912_v29 = vpack.c.bf16 %v2271_v28, %v2270_v26  ;;  %v1434_v9 = vrot.slane %v2272_v53, %v3337_v39 }
 0x3be   : > { %2639 = vmatmul.mubr.msk.f32.vlgmr.msra.gmra.mrb[8].mxu1 %vm412_vm4, %v3208_v35  ;;  %v2926_v35 = vpack.c.bf16 %v2282_v10, %v2281_v54  ;;  %2904 = vmatpush3.bf16.msra.mxu0 %v2903_v34  ;;  %v1370_v54 = vrot.slane %v2272_v53, %v3297_v63 }
 0x3bf   : > { %2917 = vmatpush3.bf16.msra.mxu1 %v2914_v18  ;;  %v2267_v18 = vld [vmem:[%s4017_s5 + $0xd8] sm:$0xff]  ;;  %2905 = vmatprep.subr.bf16.mxu0 %v3052_v14 }
 0x3c0   : > { %1355 = vrot.lane.b32.xlu1 %v3663_v27, %s3055_s11  ;;  %2919 = vmatprep.subr.bf16.mxu1 %v2918_v31  ;;  %v2906_v19 = vpack.c.bf16 %v2267_v18, %v2266_v16  ;;  %v1372_v43 = vmul.f32 %v1370_v54, %v3663_v27 }
 0x3c1   : > { %1353 = vrot.lane.b32.xlu0 %v3677_v50, %s3055_s11 }
 0x3c2   : > { %2907 = vmatpush3.bf16.msra.mxu0 %v2906_v19 }
 0x3c3   : > { %2921 = vmatpush3.bf16.msra.mxu1 %v2918_v31  ;;  %2908 = vmatprep.subr.bf16.mxu0 %v3052_v14 }
 0x3c4   : > { %1391 = vrot.lane.b32.xlu1 %v3641_v0, %s3055_s11  ;;  %2923 = vmatprep.subr.bf16.mxu1 %v2922_v36 }
 0x3c5   : > { %1389 = vrot.lane.b32.xlu0 %v3645_v60, %s3055_s11 }
 0x3c6   : > { %2910 = vmatpush3.bf16.msra.mxu0 %v2909_v25 }
 0x3c7   : > { %2925 = vmatpush3.bf16.msra.mxu1 %v2922_v36  ;;  %2911 = vmatprep.subr.bf16.mxu0 %v3052_v14  ;;  %v1362_v36 = vrot.slane %v2272_v53, %v3294_v62  ;;  %v1371_v62 = vmul.f32 %v1370_v54, %v3677_v50  ;;  %v1444_v53 = vmul.f32 %v1442_v21, %v3720_v42 }
 0x3c8   : > { %1421 = vrot.lane.b32.xlu1 %v3720_v42, %s3056_s14  ;;  %2927 = vmatprep.subr.bf16.mxu1 %v2926_v35  ;;  %v1443_v54 = vmul.f32 %v1442_v21, %v3671_v30 }
 0x3c9   : > { %1419 = vrot.lane.b32.xlu0 %v3671_v30, %s3056_s14 }
 0x3ca   : > { %2913 = vmatpush3.bf16.msra.mxu0 %v2912_v29 }
 0x3cb   : > { %2929 = vmatpush3.bf16.msra.mxu1 %v2926_v35  ;;  %2949 = vmatprep.subr.bf16.mxu0 %v3052_v14 }
 0x3cc   : > { %1427 = vrot.lane.b32.xlu1 %v3720_v42, %s3055_s11  ;;  %2931 = vmatprep.subr.bf16.mxu1 %v2930_v46 }
 0x3cd   : > { %1425 = vrot.lane.b32.xlu0 %v3671_v30, %s3055_s11  ;;  %s3972_s11 = scalar_lea.vmem [#allocation2], %s2190_s17 }
 0x3cf   : > { %2933 = vmatpush3.bf16.msra.mxu1 %v2930_v46 }
 0x3d0   : > { %2935 = vmatprep.subr.bf16.mxu1 %v2934_v56 }
 0x3d3   : > { %2937 = vmatpush3.bf16.msra.mxu1 %v2934_v56 }
 0x3d4   : > { %2939 = vmatprep.subr.bf16.mxu1 %v2938_v4 }
 0x3d7   : > { %2941 = vmatpush3.bf16.msra.mxu1 %v2938_v4 }
 0x3d8   : > { %2943 = vmatprep.subr.bf16.mxu1 %v2942_v12 }
 0x3db   : > { %2945 = vmatpush3.bf16.msra.mxu1 %v2942_v12  ;;  %v1407_v12 = vmul.f32 %v1406_v48, %v3645_v60 }
 0x3dc   : > { %2946 = vmatprep.subr.bf16.mxu1 %v3052_v14 }
 0x42a   : > { %v1386_v31 = vpop.permute.xlu1 %1385 }
 0x42b   : > { %v1384_v17 = vpop.permute.xlu0 %1383  ;;  %v1388_v63 = vsel %vm314_vm7, 0.0, %v1386_v31 }
 0x42c   : > { %v1387_v3 = vsel %vm314_vm7, 0.0, %v1384_v17  ;;  %v1400_v50 = vmul.f32 %v1398_v45, %v1388_v63  ;;  %v1625_v63 = vld [vmem:[%s4017_s5 + $0x10] sm:$0xff] }
 0x42d   : > { %v1399_v1 = vmul.f32 %v1398_v45, %v1387_v3  ;;  %v1627_v3 = vld [vmem:[%s4017_s5 + $0x20] sm:$0xff] }
 0x42e   : > { %v1350_v10 = vpop.permute.xlu1 %1349 }
 0x42f   : > { %v1352_v35 = vsel %vm314_vm7, 0.0, %v1350_v10  ;;  %v1348_v55 = vpop.permute.xlu0 %1347 }
 0x430   : > { %v1364_v32 = vmul.f32 %v1362_v36, %v1352_v35  ;;  %v1351_v33 = vsel %vm314_vm7, 0.0, %v1348_v55 }
 0x431   : > { %v1363_v41 = vmul.f32 %v1362_v36, %v1351_v33 }
 0x432   : > { %v1356_v46 = vpop.permute.xlu1 %1355  ;;  %v1374_v51 = vadd.f32 %v1372_v43, %v1364_v32 }
 0x433   : > { %v1358_v49 = vsel %vm315_vm8, 0.0, %v1356_v46  ;;  %v1354_v47 = vpop.permute.xlu0 %1353  ;;  %v1373_v27 = vadd.f32 %v1371_v62, %v1363_v41  ;;  %v1624_v62 = vld [vmem:[%s4017_s5 + $0x8] sm:$0xff] }
 0x434   : > { %v1380_v52 = vmul.f32 %v1378_v40, %v1358_v49  ;;  %v1357_v8 = vsel %vm315_vm8, 0.0, %v1354_v47  ;;  %v2950_v49 = vpack.c.bf16 %v1624_v62, %v1623_v61  ;;  %v1626_v47 = vld [vmem:[%s4017_s5 + $0x18] sm:$0xff]  ;;  %v1730_v61 = vld [vmem:[%s4018_s6 + $0x70] sm:$0xff] }
 0x435   : > { %v1379_v56 = vmul.f32 %v1378_v40, %v1357_v8  ;;  %v2953_v48 = vpack.c.bf16 %v1626_v47, %v1625_v63  ;;  %v1629_v8 = vld [vmem:[%s4017_s5 + $0x30] sm:$0xff] }
 0x436   : > { %v1382_v57 = vadd.f32 %v1380_v52, %v1374_v51  ;;  %v1392_v59 = vpop.permute.xlu1 %1391  ;;  %v1628_v51 = vld [vmem:[%s4017_s5 + $0x28] sm:$0xff] }
 0x437   : > { %v1381_v2 = vadd.f32 %v1379_v56, %v1373_v27  ;;  %v1394_v13 = vsel %vm315_vm8, 0.0, %v1392_v59  ;;  %v1390_v4 = vpop.permute.xlu0 %1389  ;;  %v2956_v52 = vpack.c.bf16 %v1628_v51, %v1627_v3  ;;  %v1630_v27 = vld [vmem:[%s4017_s5 + $0x38] sm:$0xff]  ;;  %v1633_v59 = vld [vmem:[%s4017_s5 + $0x50] sm:$0xff]  ;;  %v1879_v3 = vld [vmem:[%s4019_s7 + $0x8] sm:$0xff] }
 0x438   : > { %v1402_v5 = vadd.f32 %v1400_v50, %v1382_v57  ;;  %v1393_v7 = vsel %vm315_vm8, 0.0, %v1390_v4  ;;  %v1416_v16 = vmul.f32 %v1414_v58, %v1394_v13  ;;  %v2959_v56 = vpack.c.bf16 %v1630_v27, %v1629_v8  ;;  %v1631_v50 = vld [vmem:[%s4017_s5 + $0x40] sm:$0xff]  ;;  %v1632_v57 = vld [vmem:[%s4017_s5 + $0x48] sm:$0xff] }
 0x439   : > { %v1401_v11 = vadd.f32 %v1399_v1, %v1381_v2  ;;  %v1415_v23 = vmul.f32 %v1414_v58, %v1393_v7  ;;  %v2962_v58 = vpack.c.bf16 %v1632_v57, %v1631_v50  ;;  %v1634_v1 = vld [vmem:[%s4017_s5 + $0x58] sm:$0xff]  ;;  %v1635_v13 = vld [vmem:[%s4017_s5 + $0x60] sm:$0xff]  ;;  %v1636_v4 = vld [vmem:[%s4017_s5 + $0x68] sm:$0xff] }
 0x43a   : > { %v1410_v34 = vadd.f32 %v1408_v6, %v1402_v5  ;;  %v1422_v18 = vpop.permute.xlu1 %1421  ;;  %v2965_v2 = vpack.c.bf16 %v1634_v1, %v1633_v59  ;;  %v2968_v5 = vpack.c.bf16 %v1636_v4, %v1635_v13  ;;  %v1637_v6 = vld [vmem:[%s4017_s5 + $0x70] sm:$0xff]  ;;  %v1638_v7 = vld [vmem:[%s4017_s5 + $0x78] sm:$0xff] }
 0x43b   : > { %v1409_v19 = vadd.f32 %v1407_v12, %v1401_v11  ;;  %v1424_v24 = vsel %vm314_vm7, 0.0, %v1422_v18  ;;  %v1420_v25 = vpop.permute.xlu0 %1419 }
 0x43c   : > { %v1418_v26 = vadd.f32 %v1416_v16, %v1410_v34  ;;  %v1436_v28 = vmul.f32 %v1434_v9, %v1424_v24  ;;  %v1423_v29 = vsel %vm314_vm7, 0.0, %v1420_v25  ;;  %v1549_v34 = vld [vmem:[%s4016_s4] sm:$0xff] }
 0x43d   : > { %v1417_v39 = vadd.f32 %v1415_v23, %v1409_v19  ;;  %v1435_v31 = vmul.f32 %v1434_v9, %v1423_v29  ;;  %v2971_v9 = vpack.c.bf16 %v1638_v7, %v1637_v6  ;;  %v1721_v19 = vld [vmem:[%s4018_s6 + $0x28] sm:$0xff]  ;;  %v1716_v23 = vld [vmem:[%s4018_s6] sm:$0xff] }
 0x43e   : > { %v1438_v17 = vadd.f32 %v1436_v28, %v1418_v26  ;;  %v1428_v36 = vpop.permute.xlu1 %1427  ;;  %v1720_v25 = vld [vmem:[%s4018_s6 + $0x20] sm:$0xff]  ;;  %v1725_v26 = vld [vmem:[%s4018_s6 + $0x48] sm:$0xff] }
 0x43f   : > { %v1437_v10 = vadd.f32 %v1435_v31, %v1417_v39  ;;  %v1430_v35 = vsel %vm315_vm8, 0.0, %v1428_v36  ;;  %v1426_v55 = vpop.permute.xlu0 %1425  ;;  %v1729_v28 = vld [vmem:[%s4018_s6 + $0x68] sm:$0xff]  ;;  %v2975_v29 = vpack.c.bf16 %v1720_v25, %v1716_v23  ;;  %v1724_v31 = vld [vmem:[%s4018_s6 + $0x40] sm:$0xff] }
 0x440   : > { %v1446_v32 = vadd.f32 %v1444_v53, %v1438_v17  ;;  %v1452_v33 = vmul.f32 %v2274_v44, %v1430_v35  ;;  %v1429_v40 = vsel %vm315_vm8, 0.0, %v1426_v55  ;;  %v2977_v39 = vpack.c.bf16 %v1729_v28, %v1725_v26  ;;  %v1719_v53 = vld [vmem:[%s4018_s6 + $0x18] sm:$0xff] }
 0x441   : > { %v1445_v41 = vadd.f32 %v1443_v54, %v1437_v10  ;;  %v1451_v43 = vmul.f32 %v2274_v44, %v1429_v40  ;;  %v1728_v44 = vld [vmem:[%s4018_s6 + $0x60] sm:$0xff]  ;;  %v1723_v17 = vld [vmem:[%s4018_s6 + $0x38] sm:$0xff]  ;;  %v1718_v40 = vld [vmem:[%s4018_s6 + $0x10] sm:$0xff] }
 0x442   : > { %v1454_v46 = vadd.f32 %v1452_v33, %v1446_v32  ;;  %v2979_v36 = vpack.c.bf16 %v1728_v44, %v1724_v31  ;;  %v2981_v54 = vpack.c.bf16 %v1723_v17, %v1719_v53 }
 0x443   : > { %v1453_v45 = vadd.f32 %v1451_v43, %v1445_v41  ;;  %v1722_v41 = vld [vmem:[%s4018_s6 + $0x30] sm:$0xff]  ;;  %v1727_v43 = vld [vmem:[%s4018_s6 + $0x58] sm:$0xff] }
 0x445   : > { %2708 = vmatprep.mubr.f32.mxu1 %v1453_v45  ;;  %v1731_v45 = vld [vmem:[%s4018_s6 + $0x78] sm:$0xff] }
 0x446   : > { %2709 = vmatmul.mubr.f32.vlgmr.msra.gmra.mrb[10].mxu1 %v1454_v46  ;;  %v2983_v46 = vpack.c.bf16 %v1722_v41, %v1718_v40 }
 0x447   : > { %2715 = vmatprep.mubr.msk.f32.mxu1 %vm3053_vm1, %v3054_v15 }
 0x491   : > { %v1240_v30 = vpop.f32.mrb[8].mxu1 }
 0x492   : > { %v2640_v42 = vpop.f32.mrb[9].mxu1  ;;  %2674 = vmatmul.mubr.f32.vlgmr.msra.gmra.mrb[2].mxu0 %v1240_v30  ;;  %v2985_v30 = vpack.c.bf16 %v1731_v45, %v1727_v43 }
 0x493   : > { %2750 = vmatprep.mubr.msk.f32.mxu0 %vm3053_vm1, %v3054_v15  ;;  %2951 = vmatpush3.bf16.msra.mxu0 %v2950_v49  ;;  %v1726_v42 = vld [vmem:[%s4018_s6 + $0x50] sm:$0xff] }
 0x494   : > { %2952 = vmatprep.subr.bf16.mxu0 %v3052_v14  ;;  %v2987_v63 = vpack.c.bf16 %v1730_v61, %v1726_v42 }
 0x497   : > { %2954 = vmatpush3.bf16.msra.mxu0 %v2953_v48  ;;  %v1878_v48 = vld [vmem:[%s4019_s7] sm:$0xff] }
 0x498   : > { %2955 = vmatprep.subr.bf16.mxu0 %v3052_v14 }
 0x49b   : > { %2957 = vmatpush3.bf16.msra.mxu0 %v2956_v52 }
 0x49c   : > { %2958 = vmatprep.subr.bf16.mxu0 %v3052_v14 }
 0x49f   : > { %2960 = vmatpush3.bf16.msra.mxu0 %v2959_v56 }
 0x4a0   : > { %2961 = vmatprep.subr.bf16.mxu0 %v3052_v14 }
 0x4a3   : > { %2963 = vmatpush3.bf16.msra.mxu0 %v2962_v58 }
 0x4a4   : > { %2964 = vmatprep.subr.bf16.mxu0 %v3052_v14 }
 0x4a7   : > { %2966 = vmatpush3.bf16.msra.mxu0 %v2965_v2 }
 0x4a8   : > { %2967 = vmatprep.subr.bf16.mxu0 %v3052_v14 }
 0x4ab   : > { %2969 = vmatpush3.bf16.msra.mxu0 %v2968_v5 }
 0x4ac   : > { %2970 = vmatprep.subr.bf16.mxu0 %v3052_v14  ;;  %v1717_v14 = vld [vmem:[%s4018_s6 + $0x8] sm:$0xff] }
 0x4ad   : > { %v2973_v24 = vpack.c.bf16 %v1721_v19, %v1717_v14 }
 0x4af   : > { %2972 = vmatpush3.bf16.msra.mxu0 %v2971_v9 }
 0x519   : > { %v3899_v11 = vpop.f32.mrb[10].mxu1 }
 0x51a   : > { %v3901_v12 = vpop.f32.mrb[11].mxu1 }
 0x51b   : > { %v2947_v21 = vpack.c.bf16 %v3899_v11, %v3901_v12 }
 0x51d   : > { %2948 = vmatpush3.bf16.msra.mxu1 %v2947_v21 }
 0x51e   : > { %2974 = vmatprep.subr.bf16.mxu1 %v2973_v24 }
 0x520   : > { %2716 = vmatmul.mubr.msk.f32.vlgmr.msra.gmra.mrb[12].mxu1 %vm412_vm4, %v1549_v34 }
 0x521   : > { %1800 = vmatprep.mubr.f32.mxu1 %v3054_v15  ;;  %2976 = vmatpush1.bf16.msra.mxu1 %v2975_v29 }
 0x522   : > { %2978 = vmatprep.subr.bf16.mxu1 %v2977_v39 }
 0x525   : > { %2980 = vmatpush1.bf16.msra.mxu1 %v2979_v36 }
 0x526   : > { %2982 = vmatprep.subr.bf16.mxu1 %v2981_v54 }
 0x5f3   : > { %v1619_v16 = vpop.f32.mrb[12].mxu1 }
 0x5f4   : > { %v2717_v18 = vpop.f32.mrb[13].mxu1  ;;  %2751 = vmatmul.mubr.f32.vlgmr.msra.gmra.mrb[2].mxu0 %v1619_v16 }
 0x6c7   : > { %v1705_v10 = vpop.f32.mrb[2].mxu0 }
 0x6c8   : > { %v2292_v35 = vmul.f32 -1.442695, %v1705_v10  ;;  %v2752_v55 = vpop.f32.mrb[3].mxu0 }
 0x6ca   : > { %3024 = vpow2.f32 %v2292_v35 }
 0x6d4   : > { %v3025_v32 = vpop.eup %3024 }
 0x6d5   : > { %v1713_v33 = vadd.f32 1.0, %v3025_v32 }
 0x6d7   : > { %3026 = vrcp.f32 %v1713_v33 }
 0x6e1   : > { %v3027_v62 = vpop.eup %3026 }
 0x6e2   : > { %2293 = vmatmul.mubr.msk.f32.vlgmr.msra.gmra.mrb[14].mxu1 %vm1732_vm9, %v3027_v62 }
 0x6e3   : > { %2984 = vmatpush1.bf16.msra.mxu1 %v2983_v46  ;;  %1871 = vmatprep.mubr.f32.mxu1 %v3054_v15 }
 0x6e4   : > { %2986 = vmatprep.subr.bf16.mxu1 %v2985_v30 }
 0x6e7   : > { %2988 = vmatpush1.bf16.msra.mxu1 %v2987_v63 }
 0x6ea   : > { %2294 = vmatmul.mubr.msk.f32.vlgmr.msra.gmra.mrb[16].mxu1 %vm1732_vm9, %v3027_v62 }
 0x6eb   : > { %1951 = vmatprep.mubr.f32.mxu1 %v3054_v15 }
 0x7b5   : > { %v1802_v49 = vpop.f32.mrb[14].mxu1 }
 0x7b6   : > { %v1804_v47 = vpop.f32.mrb[15].mxu1 }
 0x7b7   : > { %1887 = vmatprep.subr.mxu1 %v1804_v47 }
 0x7b8   : > { %1888 = vmatpush1.msra.mxu1 %v1802_v49 }
 0x7b9   : > { %2295 = vmatmul.mubr.msk.f32.vlgmr.msra.gmra.mrb[18].mxu1 %vm1880_vm10, %v1878_v48 }
 0x7ba   : > { %1957 = vmatprep.mubr.f32.mxu1 %v3054_v15 }
 0x7bd   : > { %v1873_v51 = vpop.f32.mrb[16].mxu1  ;;  %2296 = vmatmul.mubr.msk.f32.gmra.mrb[20].mxu1 %vm1880_vm10, %v1879_v3 }
 0x7be   : > { %v1875_v52 = vpop.f32.mrb[17].mxu1  ;;  %2028 = vmatprep.mubr.f32.mxu1 %v3054_v15 }
 0x7bf   : > { %1964 = vmatprep.subr.mxu1 %v1875_v52 }
 0x7c0   : > { %1965 = vmatpush1.msra.mxu1 %v1873_v51 }
 0x7c1   : > { %2297 = vmatmul.mubr.msk.f32.vlgmr.msra.gmra.mrb[22].mxu1 %vm1880_vm10, %v1878_v48 }
 0x7c2   : > { %2034 = vmatprep.mubr.f32.mxu1 %v3054_v15 }
 0x7c5   : > { %2298 = vmatmul.mubr.msk.f32.gmra.mrb[24].mxu1 %vm1880_vm10, %v1879_v3 }
 0x88c   : > { %v1953_v8 = vpop.f32.mrb[18].mxu1 }
 0x88d   : > { %v2043_v27 = vmul.f32 %v1953_v8, %v3901_v12  ;;  %v1955_v56 = vpop.f32.mrb[19].mxu1 }
 0x88e   : > { %v2049_v50 = vmul.f32 %v1955_v56, %v3645_v60 }
 0x88f   : > { %2045 = vst [vmem:[%s3972_s11] sm:$0xff] %v2043_v27 }
 0x890   : > { %2301 = vst [vmem:[%s3972_s11 + $0x10] sm:$0xff] %v2049_v50  ;;  %v1959_v15 = vpop.f32.mrb[20].mxu1 }
 0x891   : > { %v2044_v57 = vmul.f32 %v3899_v11, %v1959_v15  ;;  %v1961_v58 = vpop.f32.mrb[21].mxu1 }
 0x892   : > { %v2050_v59 = vmul.f32 %v3641_v0, %v1961_v58 }
 0x893   : > { %2046 = vst [vmem:[%s3972_s11 + $0x8] sm:$0xff] %v2044_v57 }
 0x894   : > { %2302 = vst [vmem:[%s3972_s11 + $0x18] sm:$0xff] %v2050_v59  ;;  %v2030_v60 = vpop.f32.mrb[22].mxu1 }
 0x895   : > { %v2055_v1 = vmul.f32 %v2030_v60, %v3377_v38  ;;  %v2032_v2 = vpop.f32.mrb[23].mxu1 }
 0x896   : > { %v2061_v13 = vmul.f32 %v2032_v2, %v3177_v22  ;;  %2071 = sbr.rel (!%p3127_p4) target bundleno = 2213 (0x8a5), region = 56  ;;  %v2116_v22 = vld [vmem:[%s3972_s11] sm:$0xff] (%p3127_p4) }
 0x897   : > { %2305 = vst [vmem:[%s3972_s11 + $0x20] sm:$0xff] %v2055_v1  ;;  %v2120_v38 = vld [vmem:[%s3972_s11 + $0x10] sm:$0xff] (%p3127_p4)  ;;  %2117 = vst [vmem:[%s2074_s20] sm:$0xff] (%p3127_p4), %v2116_v22 }
 0x898   : > { %2309 = vst [vmem:[%s3972_s11 + $0x30] sm:$0xff] %v2061_v13  ;;  %v2036_v4 = vpop.f32.mrb[24].mxu1  ;;  %2121 = vst [vmem:[%s2074_s20 + $0x20] sm:$0xff] (%p3127_p4), %v2120_v38 }
 0x899   : > { %v2056_v5 = vmul.f32 %v3373_v37, %v2036_v4  ;;  %v2038_v6 = vpop.f32.mrb[25].mxu1 }
 0x89a   : > { %v2062_v7 = vmul.f32 %v3174_v20, %v2038_v6  ;;  %v2118_v37 = vld [vmem:[%s3972_s11 + $0x8] sm:$0xff] (%p3127_p4) }
 0x89b   : > { %2306 = vst [vmem:[%s3972_s11 + $0x28] sm:$0xff] %v2056_v5  ;;  %v2122_v20 = vld [vmem:[%s3972_s11 + $0x18] sm:$0xff] (%p3127_p4)  ;;  %2119 = vst [vmem:[%s2074_s20 + $0x8] sm:$0xff] (%p3127_p4), %v2118_v37 }
 0x89c   : > { %2310 = vst [vmem:[%s3972_s11 + $0x38] sm:$0xff] %v2062_v7  ;;  %2123 = vst [vmem:[%s2074_s20 + $0x28] sm:$0xff] (%p3127_p4), %v2122_v20 }
 0x89e   : > { %v2124_v0 = vld [vmem:[%s3972_s11 + $0x20] sm:$0xff] }
 0x89f   : > { %2125 = vst [vmem:[%s2074_s20 + $0x40] sm:$0xff] %v2124_v0  ;;  %v2128_v11 = vld [vmem:[%s3972_s11 + $0x30] sm:$0xff] }
 0x8a0   : > { %2129 = vst [vmem:[%s2074_s20 + $0x60] sm:$0xff] %v2128_v11 }
 0x8a2   : > { %v2126_v9 = vld [vmem:[%s3972_s11 + $0x28] sm:$0xff] }
 0x8a3   : > { %2127 = vst [vmem:[%s2074_s20 + $0x48] sm:$0xff] %v2126_v9  ;;  %v2130_v12 = vld [vmem:[%s3972_s11 + $0x38] sm:$0xff] }
 0x8a4   : > { %2131 = vst [vmem:[%s2074_s20 + $0x68] sm:$0xff] %v2130_v12 }
 0x8a5 PF: > { %p15_p8 = scmp.ge.s32.totalorder %s3117_s9, 4   ;;  %s4026_s27 = smov %s3046_s28 }
 0x8a6   : > { %s4027_s28 = smov %s3125_s12  ;;  %s4028_s29 = smov %s3117_s9 }
 0x8a7   :  { %17 = sbr.rel (!%p15_p8) target bundleno = 2 (0x2), region = 130 }

</bundles_post_ra>
